<compile_context>
chip_gen: v7x
topology: tpu7x:2x2x1
jax: 0.10.0
libtpu: 0.0.40
codegen_flags: <defaults>
</compile_context>

<pallas_src>
import math

import jax
import jax.numpy as jnp
from jax import lax
from jax.experimental import pallas as pl
from jax.experimental.pallas import tpu as pltpu


def _make_dpcnn_kernel(num_classes):
    """Builds the fused DPCNN kernel for one batch element (one grid step)."""

    def kernel(x_ref, wr_ref, br_ref, wc_ref, bc_ref, wf_ref, bf_ref, o_ref):
        f32 = jnp.float32
        bf16 = jnp.bfloat16

        wr = wr_ref[...]            # [3, H, F] bf16  (conv_region, kernel (3, H))
        wc = wc_ref[...]            # [3, F, F] bf16  (shared conv, kernel (3, 1))
        br = br_ref[...]            # [1, F]    f32
        bc = bc_ref[...]            # [1, F]    f32

        def conv_k3(a, w, b):
            # Height-3 conv expressed as 3 shifted MXU matmuls:
            # bf16 operands, f32 accumulation, bias added once in f32.
            lo = a.shape[0] - 2
            a16 = a.astype(bf16)
            acc = jnp.dot(a16[0:lo, :], w[0], preferred_element_type=f32)
            acc = acc + jnp.dot(a16[1:1 + lo, :], w[1], preferred_element_type=f32)
            acc = acc + jnp.dot(a16[2:2 + lo, :], w[2], preferred_element_type=f32)
            return acc + b

        def pad_seq(a, top, bot):
            # nn.ZeroPad2d((0, 0, top, bot)) along the sequence (sublane) dim.
            f = a.shape[1]
            parts = []
            if top:
                parts.append(jnp.zeros((top, f), a.dtype))
            parts.append(a)
            if bot:
                parts.append(jnp.zeros((bot, f), a.dtype))
            return jnp.concatenate(parts, axis=0) if len(parts) > 1 else a

        def max_pool_3_s2(a):
            # nn.MaxPool2d((3, 1), stride=2) along the sequence dim.
            la, f = a.shape
            lo = (la - 3) // 2 + 1
            m = jnp.maximum(jnp.maximum(a[0:la - 2, :], a[1:la - 1, :]),
                            a[2:la, :])
            # Stride-2 subsample; static unroll (length halves every block).
            rows = [m[2 * i:2 * i + 1, :] for i in range(lo)]
            return rows[0] if lo == 1 else jnp.concatenate(rows, axis=0)

        x = x_ref[0].astype(f32)                                   # [L, H]
        a = conv_k3(x, wr, br)                                     # conv_region
        a = conv_k3(jnp.maximum(pad_seq(a, 1, 1), 0.0), wc, bc)    # pad1+relu+conv
        a = conv_k3(jnp.maximum(pad_seq(a, 1, 1), 0.0), wc, bc)    # pad1+relu+conv

        while a.shape[0] >= 2:                                     # DPCNN pyramid
            px = max_pool_3_s2(pad_seq(a, 0, 1))                   # pad2 + maxpool
            h = conv_k3(jnp.maximum(pad_seq(px, 1, 1), 0.0), wc, bc)
            h = conv_k3(jnp.maximum(pad_seq(h, 1, 1), 0.0), wc, bc)
            a = h + px                                             # residual

        v = a[0:1, :]                                              # [1, F]
        logits = jnp.dot(v.astype(bf16), wf_ref[...],
                         preferred_element_type=f32) + bf_ref[...]  # [1, Cp]
        # Mask the lane padding of the classifier before the softmax.
        lane = lax.broadcasted_iota(jnp.int32, logits.shape, 1)
        logits = jnp.where(lane < num_classes, logits, -1e30)
        m = jnp.max(logits, axis=-1, keepdims=True)
        e = jnp.exp(logits - m)
        probs = e / jnp.sum(e, axis=-1, keepdims=True)
        o_ref[0] = probs.astype(o_ref.dtype)

    return kernel


def bert_dpcnn_forward(last_hidden_state, params, *, class_num):
    """last_hidden_state: [B, L, H] f32 (frozen BERT encoder output).
    Returns softmax probabilities [B, class_num]."""
    B, L, H = last_hidden_state.shape
    F = params["conv_w"].shape[-1]
    C = class_num
    Cp = ((C + 127) // 128) * 128          # lane-dense classifier width (>=128)

    bf16 = jnp.bfloat16
    f32 = jnp.float32
    w_region = params["conv_region_w"].astype(bf16)        # [3, H, F]
    b_region = params["conv_region_b"].astype(f32)         # [1, F]
    w_conv = params["conv_w"].astype(bf16)                 # [3, F, F]
    b_conv = params["conv_b"].astype(f32)                  # [1, F]
    # Classifier padded to a full 128-lane tile; padded lanes masked in-kernel.
    w_fc = jnp.zeros((F, Cp), bf16).at[:, :C].set(params["fc_w"].astype(bf16))
    b_fc = jnp.zeros((1, Cp), f32).at[:, :C].set(params["fc_b"].astype(f32))

    kernel = _make_dpcnn_kernel(C)

    def const_spec(shape, pmode):
        # Weights/biases: whole array resident, same block every grid step.
        idx = lambda b, _n=len(shape): (0,) * _n
        if pmode is None:
            return pl.BlockSpec(shape, idx)
        return pl.BlockSpec(shape, idx, pipeline_mode=pmode)

    def run(pmode):
        grid_spec = pltpu.PrefetchScalarGridSpec(
            num_scalar_prefetch=0,
            grid=(B,),                                  # one batch element / step
            in_specs=[
                pl.BlockSpec((1, L, H), lambda b: (b, 0, 0)),      # x tile
                const_spec((3, H, F), pmode), const_spec((1, F), pmode),
                const_spec((3, F, F), pmode), const_spec((1, F), pmode),
                const_spec((F, Cp), pmode), const_spec((1, Cp), pmode),
            ],
            out_specs=pl.BlockSpec((1, 1, Cp), lambda b: (b, 0, 0)),
        )
        return pl.pallas_call(
            kernel,
            out_shape=jax.ShapeDtypeStruct((B, 1, Cp), f32),
            grid_spec=grid_spec,
            compiler_params=pltpu.CompilerParams(
                dimension_semantics=("parallel",)),     # megacore over batch
        )(last_hidden_state, w_region, b_region, w_conv, b_conv, w_fc, b_fc)

    try:
        # Constant-index weight blocks never change across the grid ->
        # single-buffer them to halve their VMEM footprint (perf-review item).
        out = run(pl.Buffered(1))
    except Exception:
        # Fallback if this jax build rejects pipeline_mode / Buffered(1).
        out = run(None)

    return out[:, 0, :C]


def reference_forward(x, params):
    """Pure-JAX f32 reference mirroring the PyTorch BERTDPCNN head."""
    f32 = jnp.float32
    wr = params["conv_region_w"].astype(f32)
    br = params["conv_region_b"].astype(f32)
    wc = params["conv_w"].astype(f32)
    bc = params["conv_b"].astype(f32)
    wf = params["fc_w"].astype(f32)
    bf = params["fc_b"].astype(f32)

    def conv_k3(a, w, b):
        lo = a.shape[1] - 2
        out = sum(jnp.einsum("bti,io->bto", a[:, k:k + lo, :], w[k])
                  for k in range(3))
        return out + b

    def pad_seq(a, top, bot):
        return jnp.pad(a, ((0, 0), (top, bot), (0, 0)))

    def max_pool_3_s2(a):
        la = a.shape[1]
        lo = (la - 3) // 2 + 1
        return jnp.stack([jnp.max(a[:, 2 * i:2 * i + 3, :], axis=1)
                          for i in range(lo)], axis=1)

    a = conv_k3(x.astype(f32), wr, br)
    a = conv_k3(jnp.maximum(pad_seq(a, 1, 1), 0.0), wc, bc)
    a = conv_k3(jnp.maximum(pad_seq(a, 1, 1), 0.0), wc, bc)
    while a.shape[1] >= 2:
        px = max_pool_3_s2(pad_seq(a, 0, 1))
        h = conv_k3(jnp.maximum(pad_seq(px, 1, 1), 0.0), wc, bc)
        h = conv_k3(jnp.maximum(pad_seq(h, 1, 1), 0.0), wc, bc)
        a = h + px
    logits = a[:, 0, :] @ wf + bf
    return jax.nn.softmax(logits, axis=-1)


if __name__ == "__main__":
    # Small shapes consistent with the module:
    #   batch=2, seq_len=8 (post-tokenizer), bert_input_size=32,
    #   filter_num=16, class_num=4.
    B, L, H = 2, 8, 32
    F, C = 16, 4

    key = jax.random.PRNGKey(0)
    kx, k1, k2, k3, k4, k5, k6 = jax.random.split(key, 7)

    # TODO(synk): BertTokenizer + pretrained BertModel (string input, HF
    # checkpoint) have no Pallas equivalent; the kernel consumes the frozen
    # BERT encoder's last_hidden_state directly.
    last_hidden_state = jax.random.normal(kx, (B, L, H), dtype=jnp.float32)

    def uinit(k, shape, fan_in):
        bound = 1.0 / math.sqrt(fan_in)
        return jax.random.uniform(k, shape, jnp.float32, -bound, bound)

    params = {
        # Conv2d(1, F, (3, H)) weight [F,1,3,H] stored as [k, H, F]:
        "conv_region_w": uinit(k1, (3, H, F), 3 * H),
        "conv_region_b": uinit(k2, (1, F), 3 * H),
        # Conv2d(F, F, (3, 1)) weight [F,F,3,1] stored as [k, F_in, F_out]:
        "conv_w": uinit(k3, (3, F, F), 3 * F),
        "conv_b": uinit(k4, (1, F), 3 * F),
        # Linear(F, C) weight stored as [in, out]:
        "fc_w": uinit(k5, (F, C), F),
        "fc_b": uinit(k6, (1, C), F),
    }

    probs = bert_dpcnn_forward(last_hidden_state, params, class_num=C)
    probs = jax.block_until_ready(probs)

    ref = reference_forward(last_hidden_state, params)
    assert probs.shape == (B, C)
    # bf16 matmul operands vs f32 reference -> loose tolerance on probabilities.
    assert jnp.allclose(probs, ref, atol=2e-2, rtol=2e-2), "mismatch vs reference"

    print("KERNEL_OK")
</pallas_src>

<mosaic_0001>
module attributes {stable_mosaic.version = 11 : i64} {
  func.func @kernel(%arg0: i32, %arg1: memref<1x8x32xf32, #tpu.memory_space<vmem>>, %arg2: memref<3x32x16xbf16, #tpu.memory_space<vmem>>, %arg3: memref<1x16xf32, #tpu.memory_space<vmem>>, %arg4: memref<3x16x16xbf16, #tpu.memory_space<vmem>>, %arg5: memref<1x16xf32, #tpu.memory_space<vmem>>, %arg6: memref<16x128xbf16, #tpu.memory_space<vmem>>, %arg7: memref<1x128xf32, #tpu.memory_space<vmem>>, %arg8: memref<1x1x128xf32, #tpu.memory_space<vmem>>) attributes {dimension_semantics = [#tpu.dimension_semantics<parallel>], iteration_bounds = array<i64: 2>, scalar_prefetch = 0 : i64, scratch_operands = 0 : i64, tpu.core_type = #tpu.core_type<tc>, window_params = [{transform_indices = @transform_0, window_bounds = array<i64: 1, 8, 32>}, {pipeline_mode = #tpu.pipeline_mode<synchronous>, transform_indices = @transform_1, window_bounds = array<i64: 3, 32, 16>}, {pipeline_mode = #tpu.pipeline_mode<synchronous>, transform_indices = @transform_2, window_bounds = array<i64: 1, 16>}, {pipeline_mode = #tpu.pipeline_mode<synchronous>, transform_indices = @transform_3, window_bounds = array<i64: 3, 16, 16>}, {pipeline_mode = #tpu.pipeline_mode<synchronous>, transform_indices = @transform_4, window_bounds = array<i64: 1, 16>}, {pipeline_mode = #tpu.pipeline_mode<synchronous>, transform_indices = @transform_5, window_bounds = array<i64: 16, 128>}, {pipeline_mode = #tpu.pipeline_mode<synchronous>, transform_indices = @transform_6, window_bounds = array<i64: 1, 128>}, {transform_indices = @transform_7, window_bounds = array<i64: 1, 1, 128>}]} {
    %c0 = arith.constant 0 : index
    %c0_0 = arith.constant 0 : index
    %c0_1 = arith.constant 0 : index
    %0 = vector.load %arg2[%c0, %c0_0, %c0_1] : memref<3x32x16xbf16, #tpu.memory_space<vmem>>, vector<3x32x16xbf16>
    %c0_2 = arith.constant 0 : index
    %c0_3 = arith.constant 0 : index
    %c0_4 = arith.constant 0 : index
    %1 = vector.load %arg4[%c0_2, %c0_3, %c0_4] : memref<3x16x16xbf16, #tpu.memory_space<vmem>>, vector<3x16x16xbf16>
    %c0_5 = arith.constant 0 : index
    %c0_6 = arith.constant 0 : index
    %2 = vector.load %arg3[%c0_5, %c0_6] : memref<1x16xf32, #tpu.memory_space<vmem>>, vector<1x16xf32>
    %c0_7 = arith.constant 0 : index
    %c0_8 = arith.constant 0 : index
    %3 = vector.load %arg5[%c0_7, %c0_8] : memref<1x16xf32, #tpu.memory_space<vmem>>, vector<1x16xf32>
    %c0_9 = arith.constant 0 : index
    %c0_10 = arith.constant 0 : index
    %c0_11 = arith.constant 0 : index
    %4 = vector.load %arg1[%c0_9, %c0_10, %c0_11] : memref<1x8x32xf32, #tpu.memory_space<vmem>>, vector<1x8x32xf32>
    %5 = vector.shape_cast %4 : vector<1x8x32xf32> to vector<8x32xf32>
    %6 = arith.truncf %5 : vector<8x32xf32> to vector<8x32xbf16>
    %7 = vector.extract_strided_slice %6 {offsets = [0, 0], sizes = [6, 32], strides = [1, 1]} : vector<8x32xbf16> to vector<6x32xbf16>
    %8 = vector.extract_strided_slice %0 {offsets = [0, 0, 0], sizes = [1, 32, 16], strides = [1, 1, 1]} : vector<3x32x16xbf16> to vector<1x32x16xbf16>
    %9 = vector.shape_cast %8 : vector<1x32x16xbf16> to vector<32x16xbf16>
    %cst = arith.constant dense<0.000000e+00> : vector<6x16xf32>
    %10 = tpu.matmul %7, %9, %cst {dimension_numbers = #tpu.dot_dimension_numbers<[1], [0], [0], [1], [0, 0, 1, 1], [], []>} : vector<6x32xbf16>, vector<32x16xbf16>, vector<6x16xf32> -> vector<6x16xf32>
    %11 = vector.extract_strided_slice %6 {offsets = [1, 0], sizes = [6, 32], strides = [1, 1]} : vector<8x32xbf16> to vector<6x32xbf16>
    %12 = vector.extract_strided_slice %0 {offsets = [1, 0, 0], sizes = [1, 32, 16], strides = [1, 1, 1]} : vector<3x32x16xbf16> to vector<1x32x16xbf16>
    %13 = vector.shape_cast %12 : vector<1x32x16xbf16> to vector<32x16xbf16>
    %cst_12 = arith.constant dense<0.000000e+00> : vector<6x16xf32>
    %14 = tpu.matmul %11, %13, %cst_12 {dimension_numbers = #tpu.dot_dimension_numbers<[1], [0], [0], [1], [0, 0, 1, 1], [], []>} : vector<6x32xbf16>, vector<32x16xbf16>, vector<6x16xf32> -> vector<6x16xf32>
    %15 = arith.addf %10, %14 : vector<6x16xf32>
    %16 = vector.extract_strided_slice %6 {offsets = [2, 0], sizes = [6, 32], strides = [1, 1]} : vector<8x32xbf16> to vector<6x32xbf16>
    %17 = vector.extract_strided_slice %0 {offsets = [2, 0, 0], sizes = [1, 32, 16], strides = [1, 1, 1]} : vector<3x32x16xbf16> to vector<1x32x16xbf16>
    %18 = vector.shape_cast %17 : vector<1x32x16xbf16> to vector<32x16xbf16>
    %cst_13 = arith.constant dense<0.000000e+00> : vector<6x16xf32>
    %19 = tpu.matmul %16, %18, %cst_13 {dimension_numbers = #tpu.dot_dimension_numbers<[1], [0], [0], [1], [0, 0, 1, 1], [], []>} : vector<6x32xbf16>, vector<32x16xbf16>, vector<6x16xf32> -> vector<6x16xf32>
    %20 = arith.addf %15, %19 : vector<6x16xf32>
    %21 = vector.broadcast %2 : vector<1x16xf32> to vector<6x16xf32>
    %22 = arith.addf %20, %21 : vector<6x16xf32>
    %cst_14 = arith.constant 0.000000e+00 : f32
    %23 = vector.broadcast %cst_14 : f32 to vector<1x16xf32>
    %cst_15 = arith.constant 0.000000e+00 : f32
    %24 = vector.broadcast %cst_15 : f32 to vector<1x16xf32>
    %25 = tpu.concatenate %23, %22, %24 in 0 : vector<1x16xf32>, vector<6x16xf32>, vector<1x16xf32> -> vector<8x16xf32>
    %cst_16 = arith.constant 0.000000e+00 : f32
    %26 = vector.broadcast %cst_16 : f32 to vector<8x16xf32>
    %27 = arith.maximumf %25, %26 : vector<8x16xf32>
    %28 = arith.truncf %27 : vector<8x16xf32> to vector<8x16xbf16>
    %29 = vector.extract_strided_slice %28 {offsets = [0, 0], sizes = [6, 16], strides = [1, 1]} : vector<8x16xbf16> to vector<6x16xbf16>
    %30 = vector.extract_strided_slice %1 {offsets = [0, 0, 0], sizes = [1, 16, 16], strides = [1, 1, 1]} : vector<3x16x16xbf16> to vector<1x16x16xbf16>
    %31 = vector.shape_cast %30 : vector<1x16x16xbf16> to vector<16x16xbf16>
    %cst_17 = arith.constant dense<0.000000e+00> : vector<6x16xf32>
    %32 = tpu.matmul %29, %31, %cst_17 {dimension_numbers = #tpu.dot_dimension_numbers<[1], [0], [0], [1], [0, 0, 1, 1], [], []>} : vector<6x16xbf16>, vector<16x16xbf16>, vector<6x16xf32> -> vector<6x16xf32>
    %33 = vector.extract_strided_slice %28 {offsets = [1, 0], sizes = [6, 16], strides = [1, 1]} : vector<8x16xbf16> to vector<6x16xbf16>
    %34 = vector.extract_strided_slice %1 {offsets = [1, 0, 0], sizes = [1, 16, 16], strides = [1, 1, 1]} : vector<3x16x16xbf16> to vector<1x16x16xbf16>
    %35 = vector.shape_cast %34 : vector<1x16x16xbf16> to vector<16x16xbf16>
    %cst_18 = arith.constant dense<0.000000e+00> : vector<6x16xf32>
    %36 = tpu.matmul %33, %35, %cst_18 {dimension_numbers = #tpu.dot_dimension_numbers<[1], [0], [0], [1], [0, 0, 1, 1], [], []>} : vector<6x16xbf16>, vector<16x16xbf16>, vector<6x16xf32> -> vector<6x16xf32>
    %37 = arith.addf %32, %36 : vector<6x16xf32>
    %38 = vector.extract_strided_slice %28 {offsets = [2, 0], sizes = [6, 16], strides = [1, 1]} : vector<8x16xbf16> to vector<6x16xbf16>
    %39 = vector.extract_strided_slice %1 {offsets = [2, 0, 0], sizes = [1, 16, 16], strides = [1, 1, 1]} : vector<3x16x16xbf16> to vector<1x16x16xbf16>
    %40 = vector.shape_cast %39 : vector<1x16x16xbf16> to vector<16x16xbf16>
    %cst_19 = arith.constant dense<0.000000e+00> : vector<6x16xf32>
    %41 = tpu.matmul %38, %40, %cst_19 {dimension_numbers = #tpu.dot_dimension_numbers<[1], [0], [0], [1], [0, 0, 1, 1], [], []>} : vector<6x16xbf16>, vector<16x16xbf16>, vector<6x16xf32> -> vector<6x16xf32>
    %42 = arith.addf %37, %41 : vector<6x16xf32>
    %43 = vector.broadcast %3 : vector<1x16xf32> to vector<6x16xf32>
    %44 = arith.addf %42, %43 : vector<6x16xf32>
    %cst_20 = arith.constant 0.000000e+00 : f32
    %45 = vector.broadcast %cst_20 : f32 to vector<1x16xf32>
    %cst_21 = arith.constant 0.000000e+00 : f32
    %46 = vector.broadcast %cst_21 : f32 to vector<1x16xf32>
    %47 = tpu.concatenate %45, %44, %46 in 0 : vector<1x16xf32>, vector<6x16xf32>, vector<1x16xf32> -> vector<8x16xf32>
    %cst_22 = arith.constant 0.000000e+00 : f32
    %48 = vector.broadcast %cst_22 : f32 to vector<8x16xf32>
    %49 = arith.maximumf %47, %48 : vector<8x16xf32>
    %50 = arith.truncf %49 : vector<8x16xf32> to vector<8x16xbf16>
    %51 = vector.extract_strided_slice %50 {offsets = [0, 0], sizes = [6, 16], strides = [1, 1]} : vector<8x16xbf16> to vector<6x16xbf16>
    %52 = vector.extract_strided_slice %1 {offsets = [0, 0, 0], sizes = [1, 16, 16], strides = [1, 1, 1]} : vector<3x16x16xbf16> to vector<1x16x16xbf16>
    %53 = vector.shape_cast %52 : vector<1x16x16xbf16> to vector<16x16xbf16>
    %cst_23 = arith.constant dense<0.000000e+00> : vector<6x16xf32>
    %54 = tpu.matmul %51, %53, %cst_23 {dimension_numbers = #tpu.dot_dimension_numbers<[1], [0], [0], [1], [0, 0, 1, 1], [], []>} : vector<6x16xbf16>, vector<16x16xbf16>, vector<6x16xf32> -> vector<6x16xf32>
    %55 = vector.extract_strided_slice %50 {offsets = [1, 0], sizes = [6, 16], strides = [1, 1]} : vector<8x16xbf16> to vector<6x16xbf16>
    %56 = vector.extract_strided_slice %1 {offsets = [1, 0, 0], sizes = [1, 16, 16], strides = [1, 1, 1]} : vector<3x16x16xbf16> to vector<1x16x16xbf16>
    %57 = vector.shape_cast %56 : vector<1x16x16xbf16> to vector<16x16xbf16>
    %cst_24 = arith.constant dense<0.000000e+00> : vector<6x16xf32>
    %58 = tpu.matmul %55, %57, %cst_24 {dimension_numbers = #tpu.dot_dimension_numbers<[1], [0], [0], [1], [0, 0, 1, 1], [], []>} : vector<6x16xbf16>, vector<16x16xbf16>, vector<6x16xf32> -> vector<6x16xf32>
    %59 = arith.addf %54, %58 : vector<6x16xf32>
    %60 = vector.extract_strided_slice %50 {offsets = [2, 0], sizes = [6, 16], strides = [1, 1]} : vector<8x16xbf16> to vector<6x16xbf16>
    %61 = vector.extract_strided_slice %1 {offsets = [2, 0, 0], sizes = [1, 16, 16], strides = [1, 1, 1]} : vector<3x16x16xbf16> to vector<1x16x16xbf16>
    %62 = vector.shape_cast %61 : vector<1x16x16xbf16> to vector<16x16xbf16>
    %cst_25 = arith.constant dense<0.000000e+00> : vector<6x16xf32>
    %63 = tpu.matmul %60, %62, %cst_25 {dimension_numbers = #tpu.dot_dimension_numbers<[1], [0], [0], [1], [0, 0, 1, 1], [], []>} : vector<6x16xbf16>, vector<16x16xbf16>, vector<6x16xf32> -> vector<6x16xf32>
    %64 = arith.addf %59, %63 : vector<6x16xf32>
    %65 = vector.broadcast %3 : vector<1x16xf32> to vector<6x16xf32>
    %66 = arith.addf %64, %65 : vector<6x16xf32>
    %cst_26 = arith.constant 0.000000e+00 : f32
    %67 = vector.broadcast %cst_26 : f32 to vector<1x16xf32>
    %68 = tpu.concatenate %66, %67 in 0 : vector<6x16xf32>, vector<1x16xf32> -> vector<7x16xf32>
    %69 = vector.extract_strided_slice %68 {offsets = [0, 0], sizes = [5, 16], strides = [1, 1]} : vector<7x16xf32> to vector<5x16xf32>
    %70 = vector.extract_strided_slice %68 {offsets = [1, 0], sizes = [5, 16], strides = [1, 1]} : vector<7x16xf32> to vector<5x16xf32>
    %71 = arith.maximumf %69, %70 : vector<5x16xf32>
    %72 = vector.extract_strided_slice %68 {offsets = [2, 0], sizes = [5, 16], strides = [1, 1]} : vector<7x16xf32> to vector<5x16xf32>
    %73 = arith.maximumf %71, %72 : vector<5x16xf32>
    %74 = vector.extract_strided_slice %73 {offsets = [0, 0], sizes = [1, 16], strides = [1, 1]} : vector<5x16xf32> to vector<1x16xf32>
    %75 = vector.extract_strided_slice %73 {offsets = [2, 0], sizes = [1, 16], strides = [1, 1]} : vector<5x16xf32> to vector<1x16xf32>
    %76 = vector.extract_strided_slice %73 {offsets = [4, 0], sizes = [1, 16], strides = [1, 1]} : vector<5x16xf32> to vector<1x16xf32>
    %77 = tpu.concatenate %74, %75, %76 in 0 : vector<1x16xf32>, vector<1x16xf32>, vector<1x16xf32> -> vector<3x16xf32>
    %cst_27 = arith.constant 0.000000e+00 : f32
    %78 = vector.broadcast %cst_27 : f32 to vector<1x16xf32>
    %cst_28 = arith.constant 0.000000e+00 : f32
    %79 = vector.broadcast %cst_28 : f32 to vector<1x16xf32>
    %80 = tpu.concatenate %78, %77, %79 in 0 : vector<1x16xf32>, vector<3x16xf32>, vector<1x16xf32> -> vector<5x16xf32>
    %cst_29 = arith.constant 0.000000e+00 : f32
    %81 = vector.broadcast %cst_29 : f32 to vector<5x16xf32>
    %82 = arith.maximumf %80, %81 : vector<5x16xf32>
    %83 = arith.truncf %82 : vector<5x16xf32> to vector<5x16xbf16>
    %84 = vector.extract_strided_slice %83 {offsets = [0, 0], sizes = [3, 16], strides = [1, 1]} : vector<5x16xbf16> to vector<3x16xbf16>
    %85 = vector.extract_strided_slice %1 {offsets = [0, 0, 0], sizes = [1, 16, 16], strides = [1, 1, 1]} : vector<3x16x16xbf16> to vector<1x16x16xbf16>
    %86 = vector.shape_cast %85 : vector<1x16x16xbf16> to vector<16x16xbf16>
    %cst_30 = arith.constant dense<0.000000e+00> : vector<3x16xf32>
    %87 = tpu.matmul %84, %86, %cst_30 {dimension_numbers = #tpu.dot_dimension_numbers<[1], [0], [0], [1], [0, 0, 1, 1], [], []>} : vector<3x16xbf16>, vector<16x16xbf16>, vector<3x16xf32> -> vector<3x16xf32>
    %88 = vector.extract_strided_slice %83 {offsets = [1, 0], sizes = [3, 16], strides = [1, 1]} : vector<5x16xbf16> to vector<3x16xbf16>
    %89 = vector.extract_strided_slice %1 {offsets = [1, 0, 0], sizes = [1, 16, 16], strides = [1, 1, 1]} : vector<3x16x16xbf16> to vector<1x16x16xbf16>
    %90 = vector.shape_cast %89 : vector<1x16x16xbf16> to vector<16x16xbf16>
    %cst_31 = arith.constant dense<0.000000e+00> : vector<3x16xf32>
    %91 = tpu.matmul %88, %90, %cst_31 {dimension_numbers = #tpu.dot_dimension_numbers<[1], [0], [0], [1], [0, 0, 1, 1], [], []>} : vector<3x16xbf16>, vector<16x16xbf16>, vector<3x16xf32> -> vector<3x16xf32>
    %92 = arith.addf %87, %91 : vector<3x16xf32>
    %93 = vector.extract_strided_slice %83 {offsets = [2, 0], sizes = [3, 16], strides = [1, 1]} : vector<5x16xbf16> to vector<3x16xbf16>
    %94 = vector.extract_strided_slice %1 {offsets = [2, 0, 0], sizes = [1, 16, 16], strides = [1, 1, 1]} : vector<3x16x16xbf16> to vector<1x16x16xbf16>
    %95 = vector.shape_cast %94 : vector<1x16x16xbf16> to vector<16x16xbf16>
    %cst_32 = arith.constant dense<0.000000e+00> : vector<3x16xf32>
    %96 = tpu.matmul %93, %95, %cst_32 {dimension_numbers = #tpu.dot_dimension_numbers<[1], [0], [0], [1], [0, 0, 1, 1], [], []>} : vector<3x16xbf16>, vector<16x16xbf16>, vector<3x16xf32> -> vector<3x16xf32>
    %97 = arith.addf %92, %96 : vector<3x16xf32>
    %98 = vector.broadcast %3 : vector<1x16xf32> to vector<3x16xf32>
    %99 = arith.addf %97, %98 : vector<3x16xf32>
    %cst_33 = arith.constant 0.000000e+00 : f32
    %100 = vector.broadcast %cst_33 : f32 to vector<1x16xf32>
    %cst_34 = arith.constant 0.000000e+00 : f32
    %101 = vector.broadcast %cst_34 : f32 to vector<1x16xf32>
    %102 = tpu.concatenate %100, %99, %101 in 0 : vector<1x16xf32>, vector<3x16xf32>, vector<1x16xf32> -> vector<5x16xf32>
    %cst_35 = arith.constant 0.000000e+00 : f32
    %103 = vector.broadcast %cst_35 : f32 to vector<5x16xf32>
    %104 = arith.maximumf %102, %103 : vector<5x16xf32>
    %105 = arith.truncf %104 : vector<5x16xf32> to vector<5x16xbf16>
    %106 = vector.extract_strided_slice %105 {offsets = [0, 0], sizes = [3, 16], strides = [1, 1]} : vector<5x16xbf16> to vector<3x16xbf16>
    %107 = vector.extract_strided_slice %1 {offsets = [0, 0, 0], sizes = [1, 16, 16], strides = [1, 1, 1]} : vector<3x16x16xbf16> to vector<1x16x16xbf16>
    %108 = vector.shape_cast %107 : vector<1x16x16xbf16> to vector<16x16xbf16>
    %cst_36 = arith.constant dense<0.000000e+00> : vector<3x16xf32>
    %109 = tpu.matmul %106, %108, %cst_36 {dimension_numbers = #tpu.dot_dimension_numbers<[1], [0], [0], [1], [0, 0, 1, 1], [], []>} : vector<3x16xbf16>, vector<16x16xbf16>, vector<3x16xf32> -> vector<3x16xf32>
    %110 = vector.extract_strided_slice %105 {offsets = [1, 0], sizes = [3, 16], strides = [1, 1]} : vector<5x16xbf16> to vector<3x16xbf16>
    %111 = vector.extract_strided_slice %1 {offsets = [1, 0, 0], sizes = [1, 16, 16], strides = [1, 1, 1]} : vector<3x16x16xbf16> to vector<1x16x16xbf16>
    %112 = vector.shape_cast %111 : vector<1x16x16xbf16> to vector<16x16xbf16>
    %cst_37 = arith.constant dense<0.000000e+00> : vector<3x16xf32>
    %113 = tpu.matmul %110, %112, %cst_37 {dimension_numbers = #tpu.dot_dimension_numbers<[1], [0], [0], [1], [0, 0, 1, 1], [], []>} : vector<3x16xbf16>, vector<16x16xbf16>, vector<3x16xf32> -> vector<3x16xf32>
    %114 = arith.addf %109, %113 : vector<3x16xf32>
    %115 = vector.extract_strided_slice %105 {offsets = [2, 0], sizes = [3, 16], strides = [1, 1]} : vector<5x16xbf16> to vector<3x16xbf16>
    %116 = vector.extract_strided_slice %1 {offsets = [2, 0, 0], sizes = [1, 16, 16], strides = [1, 1, 1]} : vector<3x16x16xbf16> to vector<1x16x16xbf16>
    %117 = vector.shape_cast %116 : vector<1x16x16xbf16> to vector<16x16xbf16>
    %cst_38 = arith.constant dense<0.000000e+00> : vector<3x16xf32>
    %118 = tpu.matmul %115, %117, %cst_38 {dimension_numbers = #tpu.dot_dimension_numbers<[1], [0], [0], [1], [0, 0, 1, 1], [], []>} : vector<3x16xbf16>, vector<16x16xbf16>, vector<3x16xf32> -> vector<3x16xf32>
    %119 = arith.addf %114, %118 : vector<3x16xf32>
    %120 = vector.broadcast %3 : vector<1x16xf32> to vector<3x16xf32>
    %121 = arith.addf %119, %120 : vector<3x16xf32>
    %122 = arith.addf %121, %77 : vector<3x16xf32>
    %cst_39 = arith.constant 0.000000e+00 : f32
    %123 = vector.broadcast %cst_39 : f32 to vector<1x16xf32>
    %124 = tpu.concatenate %122, %123 in 0 : vector<3x16xf32>, vector<1x16xf32> -> vector<4x16xf32>
    %125 = vector.extract_strided_slice %124 {offsets = [0, 0], sizes = [2, 16], strides = [1, 1]} : vector<4x16xf32> to vector<2x16xf32>
    %126 = vector.extract_strided_slice %124 {offsets = [1, 0], sizes = [2, 16], strides = [1, 1]} : vector<4x16xf32> to vector<2x16xf32>
    %127 = arith.maximumf %125, %126 : vector<2x16xf32>
    %128 = vector.extract_strided_slice %124 {offsets = [2, 0], sizes = [2, 16], strides = [1, 1]} : vector<4x16xf32> to vector<2x16xf32>
    %129 = arith.maximumf %127, %128 : vector<2x16xf32>
    %130 = vector.extract_strided_slice %129 {offsets = [0, 0], sizes = [1, 16], strides = [1, 1]} : vector<2x16xf32> to vector<1x16xf32>
    %cst_40 = arith.constant 0.000000e+00 : f32
    %131 = vector.broadcast %cst_40 : f32 to vector<1x16xf32>
    %cst_41 = arith.constant 0.000000e+00 : f32
    %132 = vector.broadcast %cst_41 : f32 to vector<1x16xf32>
    %133 = tpu.concatenate %131, %130, %132 in 0 : vector<1x16xf32>, vector<1x16xf32>, vector<1x16xf32> -> vector<3x16xf32>
    %cst_42 = arith.constant 0.000000e+00 : f32
    %134 = vector.broadcast %cst_42 : f32 to vector<3x16xf32>
    %135 = arith.maximumf %133, %134 : vector<3x16xf32>
    %136 = arith.truncf %135 : vector<3x16xf32> to vector<3x16xbf16>
    %137 = vector.extract_strided_slice %136 {offsets = [0, 0], sizes = [1, 16], strides = [1, 1]} : vector<3x16xbf16> to vector<1x16xbf16>
    %138 = vector.extract_strided_slice %1 {offsets = [0, 0, 0], sizes = [1, 16, 16], strides = [1, 1, 1]} : vector<3x16x16xbf16> to vector<1x16x16xbf16>
    %139 = vector.shape_cast %138 : vector<1x16x16xbf16> to vector<16x16xbf16>
    %cst_43 = arith.constant dense<0.000000e+00> : vector<1x16xf32>
    %140 = tpu.matmul %137, %139, %cst_43 {dimension_numbers = #tpu.dot_dimension_numbers<[1], [0], [0], [1], [0, 0, 1, 1], [], []>} : vector<1x16xbf16>, vector<16x16xbf16>, vector<1x16xf32> -> vector<1x16xf32>
    %141 = vector.extract_strided_slice %136 {offsets = [1, 0], sizes = [1, 16], strides = [1, 1]} : vector<3x16xbf16> to vector<1x16xbf16>
    %142 = vector.extract_strided_slice %1 {offsets = [1, 0, 0], sizes = [1, 16, 16], strides = [1, 1, 1]} : vector<3x16x16xbf16> to vector<1x16x16xbf16>
    %143 = vector.shape_cast %142 : vector<1x16x16xbf16> to vector<16x16xbf16>
    %cst_44 = arith.constant dense<0.000000e+00> : vector<1x16xf32>
    %144 = tpu.matmul %141, %143, %cst_44 {dimension_numbers = #tpu.dot_dimension_numbers<[1], [0], [0], [1], [0, 0, 1, 1], [], []>} : vector<1x16xbf16>, vector<16x16xbf16>, vector<1x16xf32> -> vector<1x16xf32>
    %145 = arith.addf %140, %144 : vector<1x16xf32>
    %146 = vector.extract_strided_slice %136 {offsets = [2, 0], sizes = [1, 16], strides = [1, 1]} : vector<3x16xbf16> to vector<1x16xbf16>
    %147 = vector.extract_strided_slice %1 {offsets = [2, 0, 0], sizes = [1, 16, 16], strides = [1, 1, 1]} : vector<3x16x16xbf16> to vector<1x16x16xbf16>
    %148 = vector.shape_cast %147 : vector<1x16x16xbf16> to vector<16x16xbf16>
    %cst_45 = arith.constant dense<0.000000e+00> : vector<1x16xf32>
    %149 = tpu.matmul %146, %148, %cst_45 {dimension_numbers = #tpu.dot_dimension_numbers<[1], [0], [0], [1], [0, 0, 1, 1], [], []>} : vector<1x16xbf16>, vector<16x16xbf16>, vector<1x16xf32> -> vector<1x16xf32>
    %150 = arith.addf %145, %149 : vector<1x16xf32>
    %151 = arith.addf %150, %3 : vector<1x16xf32>
    %cst_46 = arith.constant 0.000000e+00 : f32
    %152 = vector.broadcast %cst_46 : f32 to vector<1x16xf32>
    %cst_47 = arith.constant 0.000000e+00 : f32
    %153 = vector.broadcast %cst_47 : f32 to vector<1x16xf32>
    %154 = tpu.concatenate %152, %151, %153 in 0 : vector<1x16xf32>, vector<1x16xf32>, vector<1x16xf32> -> vector<3x16xf32>
    %cst_48 = arith.constant 0.000000e+00 : f32
    %155 = vector.broadcast %cst_48 : f32 to vector<3x16xf32>
    %156 = arith.maximumf %154, %155 : vector<3x16xf32>
    %157 = arith.truncf %156 : vector<3x16xf32> to vector<3x16xbf16>
    %158 = vector.extract_strided_slice %157 {offsets = [0, 0], sizes = [1, 16], strides = [1, 1]} : vector<3x16xbf16> to vector<1x16xbf16>
    %159 = vector.extract_strided_slice %1 {offsets = [0, 0, 0], sizes = [1, 16, 16], strides = [1, 1, 1]} : vector<3x16x16xbf16> to vector<1x16x16xbf16>
    %160 = vector.shape_cast %159 : vector<1x16x16xbf16> to vector<16x16xbf16>
    %cst_49 = arith.constant dense<0.000000e+00> : vector<1x16xf32>
    %161 = tpu.matmul %158, %160, %cst_49 {dimension_numbers = #tpu.dot_dimension_numbers<[1], [0], [0], [1], [0, 0, 1, 1], [], []>} : vector<1x16xbf16>, vector<16x16xbf16>, vector<1x16xf32> -> vector<1x16xf32>
    %162 = vector.extract_strided_slice %157 {offsets = [1, 0], sizes = [1, 16], strides = [1, 1]} : vector<3x16xbf16> to vector<1x16xbf16>
    %163 = vector.extract_strided_slice %1 {offsets = [1, 0, 0], sizes = [1, 16, 16], strides = [1, 1, 1]} : vector<3x16x16xbf16> to vector<1x16x16xbf16>
    %164 = vector.shape_cast %163 : vector<1x16x16xbf16> to vector<16x16xbf16>
    %cst_50 = arith.constant dense<0.000000e+00> : vector<1x16xf32>
    %165 = tpu.matmul %162, %164, %cst_50 {dimension_numbers = #tpu.dot_dimension_numbers<[1], [0], [0], [1], [0, 0, 1, 1], [], []>} : vector<1x16xbf16>, vector<16x16xbf16>, vector<1x16xf32> -> vector<1x16xf32>
    %166 = arith.addf %161, %165 : vector<1x16xf32>
    %167 = vector.extract_strided_slice %157 {offsets = [2, 0], sizes = [1, 16], strides = [1, 1]} : vector<3x16xbf16> to vector<1x16xbf16>
    %168 = vector.extract_strided_slice %1 {offsets = [2, 0, 0], sizes = [1, 16, 16], strides = [1, 1, 1]} : vector<3x16x16xbf16> to vector<1x16x16xbf16>
    %169 = vector.shape_cast %168 : vector<1x16x16xbf16> to vector<16x16xbf16>
    %cst_51 = arith.constant dense<0.000000e+00> : vector<1x16xf32>
    %170 = tpu.matmul %167, %169, %cst_51 {dimension_numbers = #tpu.dot_dimension_numbers<[1], [0], [0], [1], [0, 0, 1, 1], [], []>} : vector<1x16xbf16>, vector<16x16xbf16>, vector<1x16xf32> -> vector<1x16xf32>
    %171 = arith.addf %166, %170 : vector<1x16xf32>
    %172 = arith.addf %171, %3 : vector<1x16xf32>
    %173 = arith.addf %172, %130 : vector<1x16xf32>
    %174 = arith.truncf %173 : vector<1x16xf32> to vector<1x16xbf16>
    %c0_52 = arith.constant 0 : index
    %c0_53 = arith.constant 0 : index
    %175 = vector.load %arg6[%c0_52, %c0_53] : memref<16x128xbf16, #tpu.memory_space<vmem>>, vector<16x128xbf16>
    %cst_54 = arith.constant dense<0.000000e+00> : vector<1x128xf32>
    %176 = tpu.matmul %174, %175, %cst_54 {dimension_numbers = #tpu.dot_dimension_numbers<[1], [0], [0], [1], [0, 0, 1, 1], [], []>} : vector<1x16xbf16>, vector<16x128xbf16>, vector<1x128xf32> -> vector<1x128xf32>
    %c0_55 = arith.constant 0 : index
    %c0_56 = arith.constant 0 : index
    %177 = vector.load %arg7[%c0_55, %c0_56] : memref<1x128xf32, #tpu.memory_space<vmem>>, vector<1x128xf32>
    %178 = arith.addf %176, %177 : vector<1x128xf32>
    %179 = tpu.iota {dimensions = array<i32: 1>} : vector<1x128xi32>
    %c4_i32 = arith.constant 4 : i32
    %180 = vector.broadcast %c4_i32 : i32 to vector<1x128xi32>
    %181 = arith.cmpi slt, %179, %180 : vector<1x128xi32>
    %cst_57 = arith.constant -1.000000e+30 : f32
    %182 = vector.broadcast %cst_57 : f32 to vector<1x128xf32>
    %183 = arith.select %181, %178, %182 : vector<1x128xi1>, vector<1x128xf32>
    %cst_58 = arith.constant dense<0xFF800000> : vector<1xf32>
    %184 = vector.multi_reduction <maximumf>, %183, %cst_58 [1] : vector<1x128xf32> to vector<1xf32>
    %185 = vector.shape_cast %184 : vector<1xf32> to vector<1x1xf32>
    %186 = vector.broadcast %185 : vector<1x1xf32> to vector<1x128xf32>
    %187 = arith.subf %183, %186 : vector<1x128xf32>
    %188 = math.exp %187 : vector<1x128xf32>
    %cst_59 = arith.constant dense<0.000000e+00> : vector<1xf32>
    %189 = vector.multi_reduction <add>, %188, %cst_59 [1] : vector<1x128xf32> to vector<1xf32>
    %190 = vector.shape_cast %189 : vector<1xf32> to vector<1x1xf32>
    %191 = vector.broadcast %190 : vector<1x1xf32> to vector<1x128xf32>
    %192 = arith.divf %188, %191 : vector<1x128xf32>
    %c0_60 = arith.constant 0 : index
    %c0_61 = arith.constant 0 : index
    %c0_62 = arith.constant 0 : index
    %193 = vector.load %arg8[%c0_60, %c0_61, %c0_62] : memref<1x1x128xf32, #tpu.memory_space<vmem>>, vector<1x1x128xf32>
    %194 = vector.shape_cast %193 : vector<1x1x128xf32> to vector<1x128xf32>
    %195 = vector.shape_cast %192 : vector<1x128xf32> to vector<1x1x128xf32>
    tpu.vector_store %arg8[%c0_60, %c0_61, %c0_62], %195 {strides = array<i32>} : memref<1x1x128xf32, #tpu.memory_space<vmem>>, vector<1x1x128xf32>,
    return
  }
  func.func @transform_0(%arg0: i32) -> (i32, i32, i32) {
    %c0_i32 = arith.constant 0 : i32
    %c0_i32_0 = arith.constant 0 : i32
    %c0_i32_1 = arith.constant 0 : i32
    return %arg0, %c0_i32, %c0_i32_0 : i32, i32, i32
  }
  func.func @transform_1(%arg0: i32) -> (i32, i32, i32) {
    %c0_i32 = arith.constant 0 : i32
    %c0_i32_0 = arith.constant 0 : i32
    %c0_i32_1 = arith.constant 0 : i32
    %c0_i32_2 = arith.constant 0 : i32
    return %c0_i32, %c0_i32_0, %c0_i32_1 : i32, i32, i32
  }
  func.func @transform_2(%arg0: i32) -> (i32, i32) {
    %c0_i32 = arith.constant 0 : i32
    %c0_i32_0 = arith.constant 0 : i32
    %c0_i32_1 = arith.constant 0 : i32
    return %c0_i32, %c0_i32_0 : i32, i32
  }
  func.func @transform_3(%arg0: i32) -> (i32, i32, i32) {
    %c0_i32 = arith.constant 0 : i32
    %c0_i32_0 = arith.constant 0 : i32
    %c0_i32_1 = arith.constant 0 : i32
    %c0_i32_2 = arith.constant 0 : i32
    return %c0_i32, %c0_i32_0, %c0_i32_1 : i32, i32, i32
  }
  func.func @transform_4(%arg0: i32) -> (i32, i32) {
    %c0_i32 = arith.constant 0 : i32
    %c0_i32_0 = arith.constant 0 : i32
    %c0_i32_1 = arith.constant 0 : i32
    return %c0_i32, %c0_i32_0 : i32, i32
  }
  func.func @transform_5(%arg0: i32) -> (i32, i32) {
    %c0_i32 = arith.constant 0 : i32
    %c0_i32_0 = arith.constant 0 : i32
    %c0_i32_1 = arith.constant 0 : i32
    return %c0_i32, %c0_i32_0 : i32, i32
  }
  func.func @transform_6(%arg0: i32) -> (i32, i32) {
    %c0_i32 = arith.constant 0 : i32
    %c0_i32_0 = arith.constant 0 : i32
    %c0_i32_1 = arith.constant 0 : i32
    return %c0_i32, %c0_i32_0 : i32, i32
  }
  func.func @transform_7(%arg0: i32) -> (i32, i32, i32) {
    %c0_i32 = arith.constant 0 : i32
    %c0_i32_0 = arith.constant 0 : i32
    %c0_i32_1 = arith.constant 0 : i32
    return %arg0, %c0_i32, %c0_i32_0 : i32, i32, i32
  }
}

module attributes {stable_mosaic.version = 11 : i64} {
  func.func @kernel(%arg0: i32, %arg1: memref<1x8x32xf32, #tpu.memory_space<vmem>>, %arg2: memref<3x32x16xbf16, #tpu.memory_space<vmem>>, %arg3: memref<1x16xf32, #tpu.memory_space<vmem>>, %arg4: memref<3x16x16xbf16, #tpu.memory_space<vmem>>, %arg5: memref<1x16xf32, #tpu.memory_space<vmem>>, %arg6: memref<16x128xbf16, #tpu.memory_space<vmem>>, %arg7: memref<1x128xf32, #tpu.memory_space<vmem>>, %arg8: memref<1x1x128xf32, #tpu.memory_space<vmem>>) attributes {dimension_semantics = [#tpu.dimension_semantics<parallel>], iteration_bounds = array<i64: 2>, scalar_prefetch = 0 : i64, scratch_operands = 0 : i64, tpu.core_type = #tpu.core_type<tc>, window_params = [{transform_indices = @transform_0, window_bounds = array<i64: 1, 8, 32>}, {pipeline_mode = #tpu.pipeline_mode<synchronous>, transform_indices = @transform_1, window_bounds = array<i64: 3, 32, 16>}, {pipeline_mode = #tpu.pipeline_mode<synchronous>, transform_indices = @transform_2, window_bounds = array<i64: 1, 16>}, {pipeline_mode = #tpu.pipeline_mode<synchronous>, transform_indices = @transform_3, window_bounds = array<i64: 3, 16, 16>}, {pipeline_mode = #tpu.pipeline_mode<synchronous>, transform_indices = @transform_4, window_bounds = array<i64: 1, 16>}, {pipeline_mode = #tpu.pipeline_mode<synchronous>, transform_indices = @transform_5, window_bounds = array<i64: 16, 128>}, {pipeline_mode = #tpu.pipeline_mode<synchronous>, transform_indices = @transform_6, window_bounds = array<i64: 1, 128>}, {transform_indices = @transform_7, window_bounds = array<i64: 1, 1, 128>}]} {
    %c0 = arith.constant 0 : index
    %c0_0 = arith.constant 0 : index
    %c0_1 = arith.constant 0 : index
    %0 = vector.load %arg2[%c0, %c0_0, %c0_1] : memref<3x32x16xbf16, #tpu.memory_space<vmem>>, vector<3x32x16xbf16>
    %c0_2 = arith.constant 0 : index
    %c0_3 = arith.constant 0 : index
    %c0_4 = arith.constant 0 : index
    %1 = vector.load %arg4[%c0_2, %c0_3, %c0_4] : memref<3x16x16xbf16, #tpu.memory_space<vmem>>, vector<3x16x16xbf16>
    %c0_5 = arith.constant 0 : index
    %c0_6 = arith.constant 0 : index
    %2 = vector.load %arg3[%c0_5, %c0_6] : memref<1x16xf32, #tpu.memory_space<vmem>>, vector<1x16xf32>
    %c0_7 = arith.constant 0 : index
    %c0_8 = arith.constant 0 : index
    %3 = vector.load %arg5[%c0_7, %c0_8] : memref<1x16xf32, #tpu.memory_space<vmem>>, vector<1x16xf32>
    %c0_9 = arith.constant 0 : index
    %c0_10 = arith.constant 0 : index
    %c0_11 = arith.constant 0 : index
    %4 = vector.load %arg1[%c0_9, %c0_10, %c0_11] : memref<1x8x32xf32, #tpu.memory_space<vmem>>, vector<1x8x32xf32>
    %5 = vector.shape_cast %4 : vector<1x8x32xf32> to vector<8x32xf32>
    %6 = arith.truncf %5 : vector<8x32xf32> to vector<8x32xbf16>
    %7 = vector.extract_strided_slice %6 {offsets = [0, 0], sizes = [6, 32], strides = [1, 1]} : vector<8x32xbf16> to vector<6x32xbf16>
    %8 = vector.extract_strided_slice %0 {offsets = [0, 0, 0], sizes = [1, 32, 16], strides = [1, 1, 1]} : vector<3x32x16xbf16> to vector<1x32x16xbf16>
    %9 = vector.shape_cast %8 : vector<1x32x16xbf16> to vector<32x16xbf16>
    %cst = arith.constant dense<0.000000e+00> : vector<6x16xf32>
    %10 = tpu.matmul %7, %9, %cst {dimension_numbers = #tpu.dot_dimension_numbers<[1], [0], [0], [1], [0, 0, 1, 1], [], []>} : vector<6x32xbf16>, vector<32x16xbf16>, vector<6x16xf32> -> vector<6x16xf32>
    %11 = vector.extract_strided_slice %6 {offsets = [1, 0], sizes = [6, 32], strides = [1, 1]} : vector<8x32xbf16> to vector<6x32xbf16>
    %12 = vector.extract_strided_slice %0 {offsets = [1, 0, 0], sizes = [1, 32, 16], strides = [1, 1, 1]} : vector<3x32x16xbf16> to vector<1x32x16xbf16>
    %13 = vector.shape_cast %12 : vector<1x32x16xbf16> to vector<32x16xbf16>
    %cst_12 = arith.constant dense<0.000000e+00> : vector<6x16xf32>
    %14 = tpu.matmul %11, %13, %cst_12 {dimension_numbers = #tpu.dot_dimension_numbers<[1], [0], [0], [1], [0, 0, 1, 1], [], []>} : vector<6x32xbf16>, vector<32x16xbf16>, vector<6x16xf32> -> vector<6x16xf32>
    %15 = arith.addf %10, %14 : vector<6x16xf32>
    %16 = vector.extract_strided_slice %6 {offsets = [2, 0], sizes = [6, 32], strides = [1, 1]} : vector<8x32xbf16> to vector<6x32xbf16>
    %17 = vector.extract_strided_slice %0 {offsets = [2, 0, 0], sizes = [1, 32, 16], strides = [1, 1, 1]} : vector<3x32x16xbf16> to vector<1x32x16xbf16>
    %18 = vector.shape_cast %17 : vector<1x32x16xbf16> to vector<32x16xbf16>
    %cst_13 = arith.constant dense<0.000000e+00> : vector<6x16xf32>
    %19 = tpu.matmul %16, %18, %cst_13 {dimension_numbers = #tpu.dot_dimension_numbers<[1], [0], [0], [1], [0, 0, 1, 1], [], []>} : vector<6x32xbf16>, vector<32x16xbf16>, vector<6x16xf32> -> vector<6x16xf32>
    %20 = arith.addf %15, %19 : vector<6x16xf32>
    %21 = vector.broadcast %2 : vector<1x16xf32> to vector<6x16xf32>
    %22 = arith.addf %20, %21 : vector<6x16xf32>
    %cst_14 = arith.constant 0.000000e+00 : f32
    %23 = vector.broadcast %cst_14 : f32 to vector<1x16xf32>
    %cst_15 = arith.constant 0.000000e+00 : f32
    %24 = vector.broadcast %cst_15 : f32 to vector<1x16xf32>
    %25 = tpu.concatenate %23, %22, %24 in 0 : vector<1x16xf32>, vector<6x16xf32>, vector<1x16xf32> -> vector<8x16xf32>
    %cst_16 = arith.constant 0.000000e+00 : f32
    %26 = vector.broadcast %cst_16 : f32 to vector<8x16xf32>
    %27 = arith.maximumf %25, %26 : vector<8x16xf32>
    %28 = arith.truncf %27 : vector<8x16xf32> to vector<8x16xbf16>
    %29 = vector.extract_strided_slice %28 {offsets = [0, 0], sizes = [6, 16], strides = [1, 1]} : vector<8x16xbf16> to vector<6x16xbf16>
    %30 = vector.extract_strided_slice %1 {offsets = [0, 0, 0], sizes = [1, 16, 16], strides = [1, 1, 1]} : vector<3x16x16xbf16> to vector<1x16x16xbf16>
    %31 = vector.shape_cast %30 : vector<1x16x16xbf16> to vector<16x16xbf16>
    %cst_17 = arith.constant dense<0.000000e+00> : vector<6x16xf32>
    %32 = tpu.matmul %29, %31, %cst_17 {dimension_numbers = #tpu.dot_dimension_numbers<[1], [0], [0], [1], [0, 0, 1, 1], [], []>} : vector<6x16xbf16>, vector<16x16xbf16>, vector<6x16xf32> -> vector<6x16xf32>
    %33 = vector.extract_strided_slice %28 {offsets = [1, 0], sizes = [6, 16], strides = [1, 1]} : vector<8x16xbf16> to vector<6x16xbf16>
    %34 = vector.extract_strided_slice %1 {offsets = [1, 0, 0], sizes = [1, 16, 16], strides = [1, 1, 1]} : vector<3x16x16xbf16> to vector<1x16x16xbf16>
    %35 = vector.shape_cast %34 : vector<1x16x16xbf16> to vector<16x16xbf16>
    %cst_18 = arith.constant dense<0.000000e+00> : vector<6x16xf32>
    %36 = tpu.matmul %33, %35, %cst_18 {dimension_numbers = #tpu.dot_dimension_numbers<[1], [0], [0], [1], [0, 0, 1, 1], [], []>} : vector<6x16xbf16>, vector<16x16xbf16>, vector<6x16xf32> -> vector<6x16xf32>
    %37 = arith.addf %32, %36 : vector<6x16xf32>
    %38 = vector.extract_strided_slice %28 {offsets = [2, 0], sizes = [6, 16], strides = [1, 1]} : vector<8x16xbf16> to vector<6x16xbf16>
    %39 = vector.extract_strided_slice %1 {offsets = [2, 0, 0], sizes = [1, 16, 16], strides = [1, 1, 1]} : vector<3x16x16xbf16> to vector<1x16x16xbf16>
    %40 = vector.shape_cast %39 : vector<1x16x16xbf16> to vector<16x16xbf16>
    %cst_19 = arith.constant dense<0.000000e+00> : vector<6x16xf32>
    %41 = tpu.matmul %38, %40, %cst_19 {dimension_numbers = #tpu.dot_dimension_numbers<[1], [0], [0], [1], [0, 0, 1, 1], [], []>} : vector<6x16xbf16>, vector<16x16xbf16>, vector<6x16xf32> -> vector<6x16xf32>
    %42 = arith.addf %37, %41 : vector<6x16xf32>
    %43 = vector.broadcast %3 : vector<1x16xf32> to vector<6x16xf32>
    %44 = arith.addf %42, %43 : vector<6x16xf32>
    %cst_20 = arith.constant 0.000000e+00 : f32
    %45 = vector.broadcast %cst_20 : f32 to vector<1x16xf32>
    %cst_21 = arith.constant 0.000000e+00 : f32
    %46 = vector.broadcast %cst_21 : f32 to vector<1x16xf32>
    %47 = tpu.concatenate %45, %44, %46 in 0 : vector<1x16xf32>, vector<6x16xf32>, vector<1x16xf32> -> vector<8x16xf32>
    %cst_22 = arith.constant 0.000000e+00 : f32
    %48 = vector.broadcast %cst_22 : f32 to vector<8x16xf32>
    %49 = arith.maximumf %47, %48 : vector<8x16xf32>
    %50 = arith.truncf %49 : vector<8x16xf32> to vector<8x16xbf16>
    %51 = vector.extract_strided_slice %50 {offsets = [0, 0], sizes = [6, 16], strides = [1, 1]} : vector<8x16xbf16> to vector<6x16xbf16>
    %52 = vector.extract_strided_slice %1 {offsets = [0, 0, 0], sizes = [1, 16, 16], strides = [1, 1, 1]} : vector<3x16x16xbf16> to vector<1x16x16xbf16>
    %53 = vector.shape_cast %52 : vector<1x16x16xbf16> to vector<16x16xbf16>
    %cst_23 = arith.constant dense<0.000000e+00> : vector<6x16xf32>
    %54 = tpu.matmul %51, %53, %cst_23 {dimension_numbers = #tpu.dot_dimension_numbers<[1], [0], [0], [1], [0, 0, 1, 1], [], []>} : vector<6x16xbf16>, vector<16x16xbf16>, vector<6x16xf32> -> vector<6x16xf32>
    %55 = vector.extract_strided_slice %50 {offsets = [1, 0], sizes = [6, 16], strides = [1, 1]} : vector<8x16xbf16> to vector<6x16xbf16>
    %56 = vector.extract_strided_slice %1 {offsets = [1, 0, 0], sizes = [1, 16, 16], strides = [1, 1, 1]} : vector<3x16x16xbf16> to vector<1x16x16xbf16>
    %57 = vector.shape_cast %56 : vector<1x16x16xbf16> to vector<16x16xbf16>
    %cst_24 = arith.constant dense<0.000000e+00> : vector<6x16xf32>
    %58 = tpu.matmul %55, %57, %cst_24 {dimension_numbers = #tpu.dot_dimension_numbers<[1], [0], [0], [1], [0, 0, 1, 1], [], []>} : vector<6x16xbf16>, vector<16x16xbf16>, vector<6x16xf32> -> vector<6x16xf32>
    %59 = arith.addf %54, %58 : vector<6x16xf32>
    %60 = vector.extract_strided_slice %50 {offsets = [2, 0], sizes = [6, 16], strides = [1, 1]} : vector<8x16xbf16> to vector<6x16xbf16>
    %61 = vector.extract_strided_slice %1 {offsets = [2, 0, 0], sizes = [1, 16, 16], strides = [1, 1, 1]} : vector<3x16x16xbf16> to vector<1x16x16xbf16>
    %62 = vector.shape_cast %61 : vector<1x16x16xbf16> to vector<16x16xbf16>
    %cst_25 = arith.constant dense<0.000000e+00> : vector<6x16xf32>
    %63 = tpu.matmul %60, %62, %cst_25 {dimension_numbers = #tpu.dot_dimension_numbers<[1], [0], [0], [1], [0, 0, 1, 1], [], []>} : vector<6x16xbf16>, vector<16x16xbf16>, vector<6x16xf32> -> vector<6x16xf32>
    %64 = arith.addf %59, %63 : vector<6x16xf32>
    %65 = vector.broadcast %3 : vector<1x16xf32> to vector<6x16xf32>
    %66 = arith.addf %64, %65 : vector<6x16xf32>
    %cst_26 = arith.constant 0.000000e+00 : f32
    %67 = vector.broadcast %cst_26 : f32 to vector<1x16xf32>
    %68 = tpu.concatenate %66, %67 in 0 : vector<6x16xf32>, vector<1x16xf32> -> vector<7x16xf32>
    %69 = vector.extract_strided_slice %68 {offsets = [0, 0], sizes = [5, 16], strides = [1, 1]} : vector<7x16xf32> to vector<5x16xf32>
    %70 = vector.extract_strided_slice %68 {offsets = [1, 0], sizes = [5, 16], strides = [1, 1]} : vector<7x16xf32> to vector<5x16xf32>
    %71 = arith.maximumf %69, %70 : vector<5x16xf32>
    %72 = vector.extract_strided_slice %68 {offsets = [2, 0], sizes = [5, 16], strides = [1, 1]} : vector<7x16xf32> to vector<5x16xf32>
    %73 = arith.maximumf %71, %72 : vector<5x16xf32>
    %74 = vector.extract_strided_slice %73 {offsets = [0, 0], sizes = [1, 16], strides = [1, 1]} : vector<5x16xf32> to vector<1x16xf32>
    %75 = vector.extract_strided_slice %73 {offsets = [2, 0], sizes = [1, 16], strides = [1, 1]} : vector<5x16xf32> to vector<1x16xf32>
    %76 = vector.extract_strided_slice %73 {offsets = [4, 0], sizes = [1, 16], strides = [1, 1]} : vector<5x16xf32> to vector<1x16xf32>
    %77 = tpu.concatenate %74, %75, %76 in 0 : vector<1x16xf32>, vector<1x16xf32>, vector<1x16xf32> -> vector<3x16xf32>
    %cst_27 = arith.constant 0.000000e+00 : f32
    %78 = vector.broadcast %cst_27 : f32 to vector<1x16xf32>
    %cst_28 = arith.constant 0.000000e+00 : f32
    %79 = vector.broadcast %cst_28 : f32 to vector<1x16xf32>
    %80 = tpu.concatenate %78, %77, %79 in 0 : vector<1x16xf32>, vector<3x16xf32>, vector<1x16xf32> -> vector<5x16xf32>
    %cst_29 = arith.constant 0.000000e+00 : f32
    %81 = vector.broadcast %cst_29 : f32 to vector<5x16xf32>
    %82 = arith.maximumf %80, %81 : vector<5x16xf32>
    %83 = arith.truncf %82 : vector<5x16xf32> to vector<5x16xbf16>
    %84 = vector.extract_strided_slice %83 {offsets = [0, 0], sizes = [3, 16], strides = [1, 1]} : vector<5x16xbf16> to vector<3x16xbf16>
    %85 = vector.extract_strided_slice %1 {offsets = [0, 0, 0], sizes = [1, 16, 16], strides = [1, 1, 1]} : vector<3x16x16xbf16> to vector<1x16x16xbf16>
    %86 = vector.shape_cast %85 : vector<1x16x16xbf16> to vector<16x16xbf16>
    %cst_30 = arith.constant dense<0.000000e+00> : vector<3x16xf32>
    %87 = tpu.matmul %84, %86, %cst_30 {dimension_numbers = #tpu.dot_dimension_numbers<[1], [0], [0], [1], [0, 0, 1, 1], [], []>} : vector<3x16xbf16>, vector<16x16xbf16>, vector<3x16xf32> -> vector<3x16xf32>
    %88 = vector.extract_strided_slice %83 {offsets = [1, 0], sizes = [3, 16], strides = [1, 1]} : vector<5x16xbf16> to vector<3x16xbf16>
    %89 = vector.extract_strided_slice %1 {offsets = [1, 0, 0], sizes = [1, 16, 16], strides = [1, 1, 1]} : vector<3x16x16xbf16> to vector<1x16x16xbf16>
    %90 = vector.shape_cast %89 : vector<1x16x16xbf16> to vector<16x16xbf16>
    %cst_31 = arith.constant dense<0.000000e+00> : vector<3x16xf32>
    %91 = tpu.matmul %88, %90, %cst_31 {dimension_numbers = #tpu.dot_dimension_numbers<[1], [0], [0], [1], [0, 0, 1, 1], [], []>} : vector<3x16xbf16>, vector<16x16xbf16>, vector<3x16xf32> -> vector<3x16xf32>
    %92 = arith.addf %87, %91 : vector<3x16xf32>
    %93 = vector.extract_strided_slice %83 {offsets = [2, 0], sizes = [3, 16], strides = [1, 1]} : vector<5x16xbf16> to vector<3x16xbf16>
    %94 = vector.extract_strided_slice %1 {offsets = [2, 0, 0], sizes = [1, 16, 16], strides = [1, 1, 1]} : vector<3x16x16xbf16> to vector<1x16x16xbf16>
    %95 = vector.shape_cast %94 : vector<1x16x16xbf16> to vector<16x16xbf16>
    %cst_32 = arith.constant dense<0.000000e+00> : vector<3x16xf32>
    %96 = tpu.matmul %93, %95, %cst_32 {dimension_numbers = #tpu.dot_dimension_numbers<[1], [0], [0], [1], [0, 0, 1, 1], [], []>} : vector<3x16xbf16>, vector<16x16xbf16>, vector<3x16xf32> -> vector<3x16xf32>
    %97 = arith.addf %92, %96 : vector<3x16xf32>
    %98 = vector.broadcast %3 : vector<1x16xf32> to vector<3x16xf32>
    %99 = arith.addf %97, %98 : vector<3x16xf32>
    %cst_33 = arith.constant 0.000000e+00 : f32
    %100 = vector.broadcast %cst_33 : f32 to vector<1x16xf32>
    %cst_34 = arith.constant 0.000000e+00 : f32
    %101 = vector.broadcast %cst_34 : f32 to vector<1x16xf32>
    %102 = tpu.concatenate %100, %99, %101 in 0 : vector<1x16xf32>, vector<3x16xf32>, vector<1x16xf32> -> vector<5x16xf32>
    %cst_35 = arith.constant 0.000000e+00 : f32
    %103 = vector.broadcast %cst_35 : f32 to vector<5x16xf32>
    %104 = arith.maximumf %102, %103 : vector<5x16xf32>
    %105 = arith.truncf %104 : vector<5x16xf32> to vector<5x16xbf16>
    %106 = vector.extract_strided_slice %105 {offsets = [0, 0], sizes = [3, 16], strides = [1, 1]} : vector<5x16xbf16> to vector<3x16xbf16>
    %107 = vector.extract_strided_slice %1 {offsets = [0, 0, 0], sizes = [1, 16, 16], strides = [1, 1, 1]} : vector<3x16x16xbf16> to vector<1x16x16xbf16>
    %108 = vector.shape_cast %107 : vector<1x16x16xbf16> to vector<16x16xbf16>
    %cst_36 = arith.constant dense<0.000000e+00> : vector<3x16xf32>
    %109 = tpu.matmul %106, %108, %cst_36 {dimension_numbers = #tpu.dot_dimension_numbers<[1], [0], [0], [1], [0, 0, 1, 1], [], []>} : vector<3x16xbf16>, vector<16x16xbf16>, vector<3x16xf32> -> vector<3x16xf32>
    %110 = vector.extract_strided_slice %105 {offsets = [1, 0], sizes = [3, 16], strides = [1, 1]} : vector<5x16xbf16> to vector<3x16xbf16>
    %111 = vector.extract_strided_slice %1 {offsets = [1, 0, 0], sizes = [1, 16, 16], strides = [1, 1, 1]} : vector<3x16x16xbf16> to vector<1x16x16xbf16>
    %112 = vector.shape_cast %111 : vector<1x16x16xbf16> to vector<16x16xbf16>
    %cst_37 = arith.constant dense<0.000000e+00> : vector<3x16xf32>
    %113 = tpu.matmul %110, %112, %cst_37 {dimension_numbers = #tpu.dot_dimension_numbers<[1], [0], [0], [1], [0, 0, 1, 1], [], []>} : vector<3x16xbf16>, vector<16x16xbf16>, vector<3x16xf32> -> vector<3x16xf32>
    %114 = arith.addf %109, %113 : vector<3x16xf32>
    %115 = vector.extract_strided_slice %105 {offsets = [2, 0], sizes = [3, 16], strides = [1, 1]} : vector<5x16xbf16> to vector<3x16xbf16>
    %116 = vector.extract_strided_slice %1 {offsets = [2, 0, 0], sizes = [1, 16, 16], strides = [1, 1, 1]} : vector<3x16x16xbf16> to vector<1x16x16xbf16>
    %117 = vector.shape_cast %116 : vector<1x16x16xbf16> to vector<16x16xbf16>
    %cst_38 = arith.constant dense<0.000000e+00> : vector<3x16xf32>
    %118 = tpu.matmul %115, %117, %cst_38 {dimension_numbers = #tpu.dot_dimension_numbers<[1], [0], [0], [1], [0, 0, 1, 1], [], []>} : vector<3x16xbf16>, vector<16x16xbf16>, vector<3x16xf32> -> vector<3x16xf32>
    %119 = arith.addf %114, %118 : vector<3x16xf32>
    %120 = vector.broadcast %3 : vector<1x16xf32> to vector<3x16xf32>
    %121 = arith.addf %119, %120 : vector<3x16xf32>
    %122 = arith.addf %121, %77 : vector<3x16xf32>
    %cst_39 = arith.constant 0.000000e+00 : f32
    %123 = vector.broadcast %cst_39 : f32 to vector<1x16xf32>
    %124 = tpu.concatenate %122, %123 in 0 : vector<3x16xf32>, vector<1x16xf32> -> vector<4x16xf32>
    %125 = vector.extract_strided_slice %124 {offsets = [0, 0], sizes = [2, 16], strides = [1, 1]} : vector<4x16xf32> to vector<2x16xf32>
    %126 = vector.extract_strided_slice %124 {offsets = [1, 0], sizes = [2, 16], strides = [1, 1]} : vector<4x16xf32> to vector<2x16xf32>
    %127 = arith.maximumf %125, %126 : vector<2x16xf32>
    %128 = vector.extract_strided_slice %124 {offsets = [2, 0], sizes = [2, 16], strides = [1, 1]} : vector<4x16xf32> to vector<2x16xf32>
    %129 = arith.maximumf %127, %128 : vector<2x16xf32>
    %130 = vector.extract_strided_slice %129 {offsets = [0, 0], sizes = [1, 16], strides = [1, 1]} : vector<2x16xf32> to vector<1x16xf32>
    %cst_40 = arith.constant 0.000000e+00 : f32
    %131 = vector.broadcast %cst_40 : f32 to vector<1x16xf32>
    %cst_41 = arith.constant 0.000000e+00 : f32
    %132 = vector.broadcast %cst_41 : f32 to vector<1x16xf32>
    %133 = tpu.concatenate %131, %130, %132 in 0 : vector<1x16xf32>, vector<1x16xf32>, vector<1x16xf32> -> vector<3x16xf32>
    %cst_42 = arith.constant 0.000000e+00 : f32
    %134 = vector.broadcast %cst_42 : f32 to vector<3x16xf32>
    %135 = arith.maximumf %133, %134 : vector<3x16xf32>
    %136 = arith.truncf %135 : vector<3x16xf32> to vector<3x16xbf16>
    %137 = vector.extract_strided_slice %136 {offsets = [0, 0], sizes = [1, 16], strides = [1, 1]} : vector<3x16xbf16> to vector<1x16xbf16>
    %138 = vector.extract_strided_slice %1 {offsets = [0, 0, 0], sizes = [1, 16, 16], strides = [1, 1, 1]} : vector<3x16x16xbf16> to vector<1x16x16xbf16>
    %139 = vector.shape_cast %138 : vector<1x16x16xbf16> to vector<16x16xbf16>
    %cst_43 = arith.constant dense<0.000000e+00> : vector<1x16xf32>
    %140 = tpu.matmul %137, %139, %cst_43 {dimension_numbers = #tpu.dot_dimension_numbers<[1], [0], [0], [1], [0, 0, 1, 1], [], []>} : vector<1x16xbf16>, vector<16x16xbf16>, vector<1x16xf32> -> vector<1x16xf32>
    %141 = vector.extract_strided_slice %136 {offsets = [1, 0], sizes = [1, 16], strides = [1, 1]} : vector<3x16xbf16> to vector<1x16xbf16>
    %142 = vector.extract_strided_slice %1 {offsets = [1, 0, 0], sizes = [1, 16, 16], strides = [1, 1, 1]} : vector<3x16x16xbf16> to vector<1x16x16xbf16>
    %143 = vector.shape_cast %142 : vector<1x16x16xbf16> to vector<16x16xbf16>
    %cst_44 = arith.constant dense<0.000000e+00> : vector<1x16xf32>
    %144 = tpu.matmul %141, %143, %cst_44 {dimension_numbers = #tpu.dot_dimension_numbers<[1], [0], [0], [1], [0, 0, 1, 1], [], []>} : vector<1x16xbf16>, vector<16x16xbf16>, vector<1x16xf32> -> vector<1x16xf32>
    %145 = arith.addf %140, %144 : vector<1x16xf32>
    %146 = vector.extract_strided_slice %136 {offsets = [2, 0], sizes = [1, 16], strides = [1, 1]} : vector<3x16xbf16> to vector<1x16xbf16>
    %147 = vector.extract_strided_slice %1 {offsets = [2, 0, 0], sizes = [1, 16, 16], strides = [1, 1, 1]} : vector<3x16x16xbf16> to vector<1x16x16xbf16>
    %148 = vector.shape_cast %147 : vector<1x16x16xbf16> to vector<16x16xbf16>
    %cst_45 = arith.constant dense<0.000000e+00> : vector<1x16xf32>
    %149 = tpu.matmul %146, %148, %cst_45 {dimension_numbers = #tpu.dot_dimension_numbers<[1], [0], [0], [1], [0, 0, 1, 1], [], []>} : vector<1x16xbf16>, vector<16x16xbf16>, vector<1x16xf32> -> vector<1x16xf32>
    %150 = arith.addf %145, %149 : vector<1x16xf32>
    %151 = arith.addf %150, %3 : vector<1x16xf32>
    %cst_46 = arith.constant 0.000000e+00 : f32
    %152 = vector.broadcast %cst_46 : f32 to vector<1x16xf32>
    %cst_47 = arith.constant 0.000000e+00 : f32
    %153 = vector.broadcast %cst_47 : f32 to vector<1x16xf32>
    %154 = tpu.concatenate %152, %151, %153 in 0 : vector<1x16xf32>, vector<1x16xf32>, vector<1x16xf32> -> vector<3x16xf32>
    %cst_48 = arith.constant 0.000000e+00 : f32
    %155 = vector.broadcast %cst_48 : f32 to vector<3x16xf32>
    %156 = arith.maximumf %154, %155 : vector<3x16xf32>
    %157 = arith.truncf %156 : vector<3x16xf32> to vector<3x16xbf16>
    %158 = vector.extract_strided_slice %157 {offsets = [0, 0], sizes = [1, 16], strides = [1, 1]} : vector<3x16xbf16> to vector<1x16xbf16>
    %159 = vector.extract_strided_slice %1 {offsets = [0, 0, 0], sizes = [1, 16, 16], strides = [1, 1, 1]} : vector<3x16x16xbf16> to vector<1x16x16xbf16>
    %160 = vector.shape_cast %159 : vector<1x16x16xbf16> to vector<16x16xbf16>
    %cst_49 = arith.constant dense<0.000000e+00> : vector<1x16xf32>
    %161 = tpu.matmul %158, %160, %cst_49 {dimension_numbers = #tpu.dot_dimension_numbers<[1], [0], [0], [1], [0, 0, 1, 1], [], []>} : vector<1x16xbf16>, vector<16x16xbf16>, vector<1x16xf32> -> vector<1x16xf32>
    %162 = vector.extract_strided_slice %157 {offsets = [1, 0], sizes = [1, 16], strides = [1, 1]} : vector<3x16xbf16> to vector<1x16xbf16>
    %163 = vector.extract_strided_slice %1 {offsets = [1, 0, 0], sizes = [1, 16, 16], strides = [1, 1, 1]} : vector<3x16x16xbf16> to vector<1x16x16xbf16>
    %164 = vector.shape_cast %163 : vector<1x16x16xbf16> to vector<16x16xbf16>
    %cst_50 = arith.constant dense<0.000000e+00> : vector<1x16xf32>
    %165 = tpu.matmul %162, %164, %cst_50 {dimension_numbers = #tpu.dot_dimension_numbers<[1], [0], [0], [1], [0, 0, 1, 1], [], []>} : vector<1x16xbf16>, vector<16x16xbf16>, vector<1x16xf32> -> vector<1x16xf32>
    %166 = arith.addf %161, %165 : vector<1x16xf32>
    %167 = vector.extract_strided_slice %157 {offsets = [2, 0], sizes = [1, 16], strides = [1, 1]} : vector<3x16xbf16> to vector<1x16xbf16>
    %168 = vector.extract_strided_slice %1 {offsets = [2, 0, 0], sizes = [1, 16, 16], strides = [1, 1, 1]} : vector<3x16x16xbf16> to vector<1x16x16xbf16>
    %169 = vector.shape_cast %168 : vector<1x16x16xbf16> to vector<16x16xbf16>
    %cst_51 = arith.constant dense<0.000000e+00> : vector<1x16xf32>
    %170 = tpu.matmul %167, %169, %cst_51 {dimension_numbers = #tpu.dot_dimension_numbers<[1], [0], [0], [1], [0, 0, 1, 1], [], []>} : vector<1x16xbf16>, vector<16x16xbf16>, vector<1x16xf32> -> vector<1x16xf32>
    %171 = arith.addf %166, %170 : vector<1x16xf32>
    %172 = arith.addf %171, %3 : vector<1x16xf32>
    %173 = arith.addf %172, %130 : vector<1x16xf32>
    %174 = arith.truncf %173 : vector<1x16xf32> to vector<1x16xbf16>
    %c0_52 = arith.constant 0 : index
    %c0_53 = arith.constant 0 : index
    %175 = vector.load %arg6[%c0_52, %c0_53] : memref<16x128xbf16, #tpu.memory_space<vmem>>, vector<16x128xbf16>
    %cst_54 = arith.constant dense<0.000000e+00> : vector<1x128xf32>
    %176 = tpu.matmul %174, %175, %cst_54 {dimension_numbers = #tpu.dot_dimension_numbers<[1], [0], [0], [1], [0, 0, 1, 1], [], []>} : vector<1x16xbf16>, vector<16x128xbf16>, vector<1x128xf32> -> vector<1x128xf32>
    %c0_55 = arith.constant 0 : index
    %c0_56 = arith.constant 0 : index
    %177 = vector.load %arg7[%c0_55, %c0_56] : memref<1x128xf32, #tpu.memory_space<vmem>>, vector<1x128xf32>
    %178 = arith.addf %176, %177 : vector<1x128xf32>
    %179 = tpu.iota {dimensions = array<i32: 1>} : vector<1x128xi32>
    %c4_i32 = arith.constant 4 : i32
    %180 = vector.broadcast %c4_i32 : i32 to vector<1x128xi32>
    %181 = arith.cmpi slt, %179, %180 : vector<1x128xi32>
    %cst_57 = arith.constant -1.000000e+30 : f32
    %182 = vector.broadcast %cst_57 : f32 to vector<1x128xf32>
    %183 = arith.select %181, %178, %182 : vector<1x128xi1>, vector<1x128xf32>
    %cst_58 = arith.constant dense<0xFF800000> : vector<1xf32>
    %184 = vector.multi_reduction <maximumf>, %183, %cst_58 [1] : vector<1x128xf32> to vector<1xf32>
    %185 = vector.shape_cast %184 : vector<1xf32> to vector<1x1xf32>
    %186 = vector.broadcast %185 : vector<1x1xf32> to vector<1x128xf32>
    %187 = arith.subf %183, %186 : vector<1x128xf32>
    %188 = math.exp %187 : vector<1x128xf32>
    %cst_59 = arith.constant dense<0.000000e+00> : vector<1xf32>
    %189 = vector.multi_reduction <add>, %188, %cst_59 [1] : vector<1x128xf32> to vector<1xf32>
    %190 = vector.shape_cast %189 : vector<1xf32> to vector<1x1xf32>
    %191 = vector.broadcast %190 : vector<1x1xf32> to vector<1x128xf32>
    %192 = arith.divf %188, %191 : vector<1x128xf32>
    %c0_60 = arith.constant 0 : index
    %c0_61 = arith.constant 0 : index
    %c0_62 = arith.constant 0 : index
    %193 = vector.load %arg8[%c0_60, %c0_61, %c0_62] : memref<1x1x128xf32, #tpu.memory_space<vmem>>, vector<1x1x128xf32>
    %194 = vector.shape_cast %193 : vector<1x1x128xf32> to vector<1x128xf32>
    %195 = vector.shape_cast %192 : vector<1x128xf32> to vector<1x1x128xf32>
    tpu.vector_store %arg8[%c0_60, %c0_61, %c0_62], %195 {strides = array<i32>} : memref<1x1x128xf32, #tpu.memory_space<vmem>>, vector<1x1x128xf32>,
    return
  }
  func.func @transform_0(%arg0: i32) -> (i32, i32, i32) {
    %c0_i32 = arith.constant 0 : i32
    %c0_i32_0 = arith.constant 0 : i32
    %c0_i32_1 = arith.constant 0 : i32
    return %arg0, %c0_i32, %c0_i32_0 : i32, i32, i32
  }
  func.func @transform_1(%arg0: i32) -> (i32, i32, i32) {
    %c0_i32 = arith.constant 0 : i32
    %c0_i32_0 = arith.constant 0 : i32
    %c0_i32_1 = arith.constant 0 : i32
    %c0_i32_2 = arith.constant 0 : i32
    return %c0_i32, %c0_i32_0, %c0_i32_1 : i32, i32, i32
  }
  func.func @transform_2(%arg0: i32) -> (i32, i32) {
    %c0_i32 = arith.constant 0 : i32
    %c0_i32_0 = arith.constant 0 : i32
    %c0_i32_1 = arith.constant 0 : i32
    return %c0_i32, %c0_i32_0 : i32, i32
  }
  func.func @transform_3(%arg0: i32) -> (i32, i32, i32) {
    %c0_i32 = arith.constant 0 : i32
    %c0_i32_0 = arith.constant 0 : i32
    %c0_i32_1 = arith.constant 0 : i32
    %c0_i32_2 = arith.constant 0 : i32
    return %c0_i32, %c0_i32_0, %c0_i32_1 : i32, i32, i32
  }
  func.func @transform_4(%arg0: i32) -> (i32, i32) {
    %c0_i32 = arith.constant 0 : i32
    %c0_i32_0 = arith.constant 0 : i32
    %c0_i32_1 = arith.constant 0 : i32
    return %c0_i32, %c0_i32_0 : i32, i32
  }
  func.func @transform_5(%arg0: i32) -> (i32, i32) {
    %c0_i32 = arith.constant 0 : i32
    %c0_i32_0 = arith.constant 0 : i32
    %c0_i32_1 = arith.constant 0 : i32
    return %c0_i32, %c0_i32_0 : i32, i32
  }
  func.func @transform_6(%arg0: i32) -> (i32, i32) {
    %c0_i32 = arith.constant 0 : i32
    %c0_i32_0 = arith.constant 0 : i32
    %c0_i32_1 = arith.constant 0 : i32
    return %c0_i32, %c0_i32_0 : i32, i32
  }
  func.func @transform_7(%arg0: i32) -> (i32, i32, i32) {
    %c0_i32 = arith.constant 0 : i32
    %c0_i32_0 = arith.constant 0 : i32
    %c0_i32_1 = arith.constant 0 : i32
    return %arg0, %c0_i32, %c0_i32_0 : i32, i32, i32
  }
}

</mosaic_0001>

<bundles_post_ra>
// kernel: tpu_custom_call.1
= control target key start
LH: loop header
LB: loop body
LE: loop exit
PB: predicated region body
PF: predicated region fallthrough
CT: control target
= control target key end

     0   :  { %12 = vsyncpa [#allocation3], 0  ;;  %s2218_s0 = inlined_call_operand.vmem [shape: f32[2,8,32], index: 0, kind: input, shape index: {}]   ;;  %s2219_s1 = inlined_call_operand.vmem [shape: bf16[3,32,16], index: 1, kind: input, shape index: {}]   ;;  %s2220_s2 = inlined_call_operand.vmem [shape: f32[1,16], index: 2, kind: input, shape index: {}]   ;;  %s2221_s3 = inlined_call_operand.vmem [shape: bf16[3,16,16], index: 3, kind: input, shape index: {}]   ;;  %s2222_s4 = inlined_call_operand.vmem [shape: f32[1,16], index: 4, kind: input, shape index: {}]   ;;  %s2223_s5 = inlined_call_operand.vmem [shape: bf16[16,128], index: 5, kind: input, shape index: {}]   ;;  %s2224_s6 = inlined_call_operand.vmem [shape: f32[1,128], index: 6, kind: input, shape index: {}]   ;;  %s2225_s7 = inlined_call_operand.hbm [shape: f32[2,1,128], index: 7, kind: output, shape index: {}]  }
   0x1   :  { %14 = vsyncpa [#allocation3 + $0x1], 0  ;;  %s1927_s24 = smov 0   ;;  %s1929_s25 = smov 0  }
   0x2   :  { %s1931_s26 = smov 0   ;;  %s1933_s27 = smov 0  }
   0x3 LB: > { %s1948_s28 = sadd.s32 4294967295, %s1882_s27   ;;  %s1539_s29 = sadd.s32 4294967294, %s1882_s27   ;;  %s1882_s27 = sphi %s1933_s27, %s2231_s27   ;;  %s1878_s26 = sphi %s1931_s26, %s2230_s26   ;;  %s1874_s25 = sphi %s1929_s25, %s2229_s25   ;;  %s1870_s24 = sphi %s1927_s24, %s2228_s24  }
   0x4   : > { %s1952_s30 = sadd.s32 1, %s1882_s27   ;;  %s179_s8 = sadd.s32 1, %s1878_s26 }
   0x5   : > { %s176_s9 = ssub.s32 %s1882_s27, %s1952_s30  ;;  %p189_p0 = scmp.ne.s32.totalorder %s1878_s26, %s1874_s25 }
   0x6   : > { %p177_p1 = scmp.eq.s32.totalorder %s176_s9, 0  ;;  %p190_p2 = scmp.eq.s32.totalorder %s1948_s28, 1 }
   0x7   : > { %p195_p3 = scmp.ne.s32.totalorder %s1874_s25, %s1870_s24  ;;  %p196_p4 = scmp.eq.s32.totalorder %s1539_s29, 1 }
   0x8   : > { %s1963_s10 = scalar_select %p177_p1, %s1878_s26, %s179_s8  }
   0x9   : > { %p1965_p5 = por %p190_p2, %p189_p0  ;;  %p1969_p6 = por %p196_p4, %p195_p3 }
   0xa   : > { %p1542_p7 = scmp.ge.s32.totalorder %s1882_s27, 1  ;;  %p239_p8 = scmp.lt.s32.totalorder %s1882_s27, 3 }
   0xc   : > { %p240_p9 = pnand %p1542_p7, %p239_p8 }
   0xd   : > { %v1806_v0 = vld [vmem:[%s2219_s1 + $0x10] sm:$0xff] (!%p240_p9)   ;;  %v1884_v1 = vmov (!%p240_p9), 0.0   ;;  %v1807_v2 = vld [vmem:[%s2219_s1] sm:$0xff] (!%p240_p9)   ;;  %v1808_v3 = vld [vmem:[%s2219_s1 + $0x18] sm:$0xff] (!%p240_p9)   ;;  %vm1885_vm0 = vmmov (!%p240_p9), 0   ;;  %p269_p10 = scmp.lt.s32.totalorder (!%p240_p9), %s1948_s28, 1  ;;  %v645_v45 = vlaneseq (!%p240_p9) }
   0xe   : > { %243 = sbr.rel (%p240_p9) target bundleno = 2245 (0x8c5), region = 48  ;;  %1627 = vmatprep.subr.bf16.mxu0 (!%p240_p9), %v1884_v1  ;;  %1635 = vmatprep.subr.bf16.mxu1 (!%p240_p9), %v1884_v1  ;;  %v1809_v4 = vld [vmem:[%s2219_s1 + $0x8] sm:$0xff] (!%p240_p9)   ;;  %vm315_vm1 = vcmask (!%p240_p9), 261120   ;;  %v1810_v10 = vld [vmem:[%s2219_s1 + $0x20] sm:$0xff] (!%p240_p9)   ;;  %vm481_vm2 = vcmask (!%p240_p9), 1040384   ;;  %vm483_vm3 = vcmask (!%p240_p9), 1046528  }
   0xf   : > { %1628 = vmatpush3.bf16.msra.mxu0 (!%p240_p9), %v1806_v0  ;;  %1631 = vmatprep.mubr.msk.bf16.mxu0 (!%p240_p9), %vm1885_vm0, %v1884_v1  ;;  %v1811_v12 = vld [vmem:[%s2219_s1 + $0x28] sm:$0xff] (!%p240_p9)   ;;  %v2022_v14 = vld [vmem:[%s2221_s3] sm:$0xff] (!%p240_p9)   ;;  %vm500_vm4 = vcmask (!%p240_p9), 130048   ;;  %v2046_v40 = vld [vmem:[%s2221_s3 + $0x10] sm:$0xff] (!%p240_p9)   ;;  %v646_v48 = vshrl.u32 (!%p240_p9), %v645_v45, 7  ;;  %vm797_vm5 = vcmask (!%p240_p9), 1045504  }
  0x10   : > { %1636 = vmatpush3.bf16.msra.mxu1 (!%p240_p9), %v1807_v2  ;;  %1629 = vmatprep.subr.bf16.mxu0 (!%p240_p9), %v1884_v1  ;;  %v2028_v15 = vld [vmem:[%s2221_s3 + $0x8] sm:$0xff] (!%p240_p9)   ;;  %v1553_v25 = vld [vmem:[%s2220_s2] ss:$0 sm:$0xff] (!%p240_p9)  ;;  %vm812_vm6 = vcmask (!%p240_p9), 1041408   ;;  %vm818_vm7 = vcmask (!%p240_p9), 1043456   ;;  %vm1108_vm8 = vcmask (!%p240_p9), 1042432  }
  0x11   : > { %1637 = vmatprep.subr.bf16.mxu1 (!%p240_p9), %v1884_v1  ;;  %1639 = vmatprep.mubr.msk.bf16.mxu1 (!%p240_p9), %vm1885_vm0, %v1884_v1  ;;  %v647_v54 = vsub.s32 (!%p240_p9), 0, %v646_v48  ;;  %v2062_v55 = vld [vmem:[%s2222_s4] sm:$0x1] (!%p240_p9)  ;;  %s267_s16 = sand.u32 (!%p240_p9), 1, %s1874_s25   ;;  %s1577_s17 = sshll.u32 (!%p240_p9), %s1948_s28, 4 }
  0x12   : > { %s268_s18 = scalar_lea.vmem (!%p240_p9), [#allocation2], %s267_s16  ;;  %s1472_s23 = scalar_lea.sflag (!%p240_p9), [#allocation3], %s267_s16 }
  0x13   : > { %1630 = vmatpush3.bf16.msra.mxu0 (!%p240_p9), %v1808_v3  ;;  %v2065_v56 = vrot.slane (!%p240_p9), %v2062_v55, %v647_v54  ;;  %s1484_s19 = sshll.u32 (!%p240_p9), %s268_s18, 4  ;;  %s2178_s19 = int_to_ptr.vmem [resolvable:$true] %s1484_s19 }
  0x14   : > { %1638 = vmatpush3.bf16.msra.mxu1 (!%p240_p9), %v1809_v4  ;;  %1643 = vmatprep.subr.bf16.mxu0 (!%p240_p9), %v1884_v1  ;;  %s1820_s29 = scalar_lea.vmem (!%p240_p9), %s2178_s19, 16 }
  0x15   : > { %s270_s21 = scalar_select %p269_p10, %s1948_s28, 1  ;;  %1651 = vmatprep.subr.bf16.mxu1 %v1884_v1 }
  0x16   : > { %p1821_p11 = scmp.ne.s32.totalorder %s2178_s19, %s1820_s29  ;;  %s1886_s28 = smov [#allocation2]  }
  0x17   : > { %s1543_s22 = sshll.u32 %s270_s21, 3 }
  0x18   : > { %s272_s8 = scalar_lea.vmem %s2218_s0, %s1543_s22  ;;  %s2176_s22 = scalar_lea.hbm %s2225_s7, %s1577_s17 }
  0x19   : > { %v294_v5 = vld [vmem:[%s272_s8] sm:$0xff]  ;;  %p1822_p12 = pnand %p1821_p11, %p1965_p5  ;;  %s1824_s8 = sshll.u32 %s1886_s28, 4  ;;  %s1825_s8 = int_to_ptr.vmem [resolvable:$false] %s1824_s8 }
  0x1a   : > { %v295_v6 = vpack.c.bf16 %v294_v5, %v294_v5  ;;  %s1826_s9 = scalar_lea.vmem %s1825_s8, 32  ;;  %p1827_p0 = scmp.lt.s32.totalorder %s2178_s19, %s1825_s8 }
  0x1b   : > { %p1823_p13 = pneg %p1822_p12  ;;  %p1828_p1 = scmp.lt.s32.totalorder %s1826_s9, %s1820_s29 }
  0x1c   : > { %v297_v7 = vshrl.u32 %v295_v6, 16  ;;  %v299_v8 = vshll.u32 %v295_v6, 16  ;;  %1640 = vmatmul.mubr.msk.bf16.vlgmr.msra.gmra.mrb[0].mxu1 %vm315_vm1, %v295_v6  ;;  %v414_v13 = vrot.slane %v295_v6, 1 }
  0x1d   : > { %1653 = vmatprep.mubr.msk.bf16.mxu1 %vm1885_vm0, %v1884_v1  ;;  %1652 = vmatpush3.bf16.msra.mxu1 %v2028_v15  ;;  %p1829_p2 = por %p1828_p1, %p1827_p0 }
  0x1e   : > { %v301_v9 = vrot.slane %v299_v8, 1  ;;  %1663 = vmatprep.subr.bf16.mxu1 %v1884_v1 }
  0x1f   : > { %p1830_p3 = pnand %p1829_p2, %p1823_p13 }
  0x20   : > { %v302_v11 = vor.u32 %v301_v9, %v297_v7 }
  0x22   : > { %1632 = vmatmul.mubr.msk.bf16.vlgmr.msra.gmra.mrb[0].mxu0 %vm315_vm1, %v302_v11 }
  0x23   : > { %1644 = vmatpush3.bf16.msra.mxu0 %v1810_v10  ;;  %1647 = vmatprep.mubr.msk.bf16.mxu0 %vm1885_vm0, %v1884_v1 }
  0x24   : > { %1645 = vmatprep.subr.bf16.mxu0 %v1884_v1 }
  0x27   : > { %1646 = vmatpush3.bf16.msra.mxu0 %v1811_v12 }
  0x28   : > { %1657 = vmatprep.subr.bf16.mxu0 %v1884_v1 }
  0x2a   : > { %1648 = vmatmul.mubr.msk.bf16.vlgmr.msra.gmra.mrb[4].mxu0 %vm315_vm1, %v414_v13 }
  0x2b   : > { %1659 = vmatprep.mubr.msk.bf16.mxu0 %vm1885_vm0, %v1884_v1  ;;  %1658 = vmatpush3.bf16.msra.mxu0 %v2022_v14 }
  0x2c   : > { %1669 = vmatprep.subr.bf16.mxu0 %v1884_v1 }
  0xef   : > { %v407_v16 = vpop.f32.mrb[0].mxu1 }
  0xf0   : > { %v1641_v17 = vpop.f32.mrb[1].mxu1 }
  0xf1   : > { %v410_v18 = vpop.f32.mrb[2].mxu1 }
  0xf2   : > { %v1642_v19 = vpop.f32.mrb[3].mxu1 }
  0xf5   : > { %v353_v20 = vpop.f32.mrb[0].mxu0 }
  0xf6   : > { %v408_v21 = vadd.f32 %v407_v16, %v353_v20  ;;  %v1633_v22 = vpop.f32.mrb[1].mxu0 }
  0xf7   : > { %v356_v23 = vpop.f32.mrb[2].mxu0 }
  0xf8   : > { %v1634_v24 = vpop.f32.mrb[3].mxu0 }
  0xfd   : > { %v464_v26 = vpop.f32.mrb[4].mxu0 }
  0xfe   : > { %v470_v27 = vadd.f32 %v464_v26, %v408_v21  ;;  %v1649_v28 = vpop.f32.mrb[5].mxu0 }
  0xff   : > { %v467_v29 = vpop.f32.mrb[6].mxu0 }
 0x100   : > { %v477_v30 = vadd.f32 %v1553_v25, %v470_v27  ;;  %v1650_v31 = vpop.f32.mrb[7].mxu0 }
 0x102   : > { %v479_v32 = vrot.slane %v477_v30, 7 }
 0x104   : > { %v482_v33 = vsel %vm481_vm2, 0.0, %v479_v32 }
 0x105   : > { %v484_v34 = vsel %vm483_vm3, %v482_v33, 0.0 }
 0x106   : > { %v485_v35 = vmax.f32 %v484_v34, 0.0 }
 0x108   : > { %v486_v36 = vpack.c.bf16 %v485_v35, %v485_v35 }
 0x10a   : > { %1660 = vmatmul.mubr.msk.bf16.vlgmr.msra.gmra.mrb[8].mxu0 %vm500_vm4, %v486_v36  ;;  %v490_v37 = vshll.u32 %v486_v36, 16  ;;  %v488_v38 = vshrl.u32 %v486_v36, 16  ;;  %v593_v42 = vrot.slane %v486_v36, 1 }
 0x10b   : > { %1670 = vmatpush3.bf16.msra.mxu0 %v2028_v15  ;;  %1671 = vmatprep.mubr.msk.bf16.mxu0 %vm1885_vm0, %v1884_v1 }
 0x10c   : > { %v492_v39 = vrot.slane %v490_v37, 1  ;;  %1681 = vmatprep.subr.bf16.mxu0 %v1884_v1 }
 0x10e   : > { %v493_v41 = vor.u32 %v492_v39, %v488_v38 }
 0x110   : > { %1654 = vmatmul.mubr.msk.bf16.vlgmr.msra.gmra.mrb[4].mxu1 %vm500_vm4, %v493_v41 }
 0x111   : > { %1664 = vmatpush3.bf16.msra.mxu1 %v2046_v40  ;;  %1665 = vmatprep.mubr.msk.bf16.mxu1 %vm1885_vm0, %v1884_v1 }
 0x112   : > { %1675 = vmatprep.subr.bf16.mxu1 %v1884_v1 }
 0x118   : > { %1666 = vmatmul.mubr.msk.bf16.vlgmr.msra.gmra.mrb[8].mxu1 %vm500_vm4, %v593_v42 }
 0x119   : > { %1676 = vmatpush3.bf16.msra.mxu1 %v2022_v14  ;;  %1677 = vmatprep.mubr.msk.bf16.mxu1 %vm1885_vm0, %v1884_v1 }
 0x11a   : > { %1687 = vmatprep.subr.bf16.mxu1 %v1884_v1 }
 0x1dd   : > { %v586_v43 = vpop.f32.mrb[8].mxu0 }
 0x1de   : > { %v1661_v44 = vpop.f32.mrb[9].mxu0 }
 0x1df   : > { %v589_v46 = vpop.f32.mrb[10].mxu0 }
 0x1e0   : > { %v1662_v47 = vpop.f32.mrb[11].mxu0 }
 0x1e3   : > { %v538_v49 = vpop.f32.mrb[4].mxu1 }
 0x1e4   : > { %v587_v50 = vadd.f32 %v586_v43, %v538_v49  ;;  %v1655_v51 = vpop.f32.mrb[5].mxu1 }
 0x1e5   : > { %v541_v52 = vpop.f32.mrb[6].mxu1 }
 0x1e6   : > { %v1656_v53 = vpop.f32.mrb[7].mxu1 }
 0x1eb   : > { %v637_v57 = vpop.f32.mrb[8].mxu1 }
 0x1ec   : > { %v643_v58 = vadd.f32 %v637_v57, %v587_v50  ;;  %v1667_v59 = vpop.f32.mrb[9].mxu1 }
 0x1ed   : > { %v640_v60 = vpop.f32.mrb[10].mxu1 }
 0x1ee   : > { %v650_v61 = vadd.f32 %v2065_v56, %v643_v58  ;;  %v1668_v62 = vpop.f32.mrb[11].mxu1 }
 0x1f0   : > { %v652_v63 = vrot.slane %v650_v61, 7 }
 0x1f2   : > { %v654_v0 = vsel %vm481_vm2, 0.0, %v652_v63 }
 0x1f3   : > { %v655_v2 = vsel %vm483_vm3, %v654_v0, 0.0 }
 0x1f4   : > { %v656_v3 = vmax.f32 %v655_v2, 0.0 }
 0x1f6   : > { %v657_v4 = vpack.c.bf16 %v656_v3, %v656_v3 }
 0x1f8   : > { %1678 = vmatmul.mubr.msk.bf16.vlgmr.msra.gmra.mrb[12].mxu1 %vm500_vm4, %v657_v4  ;;  %v661_v5 = vshll.u32 %v657_v4, 16  ;;  %v659_v6 = vshrl.u32 %v657_v4, 16  ;;  %v751_v9 = vrot.slane %v657_v4, 1 }
 0x1f9   : > { %1688 = vmatpush3.bf16.msra.mxu1 %v2028_v15  ;;  %1689 = vmatprep.mubr.msk.bf16.mxu1 %vm1885_vm0, %v1884_v1 }
 0x1fa   : > { %v663_v7 = vrot.slane %v661_v5, 1  ;;  %1699 = vmatprep.subr.bf16.mxu1 %v1884_v1 }
 0x1fc   : > { %v664_v8 = vor.u32 %v663_v7, %v659_v6 }
 0x1fe   : > { %1672 = vmatmul.mubr.msk.bf16.vlgmr.msra.gmra.mrb[12].mxu0 %vm500_vm4, %v664_v8 }
 0x1ff   : > { %1682 = vmatpush3.bf16.msra.mxu0 %v2046_v40  ;;  %1683 = vmatprep.mubr.msk.bf16.mxu0 %vm1885_vm0, %v1884_v1 }
 0x200   : > { %1693 = vmatprep.subr.bf16.mxu0 %v1884_v1 }
 0x206   : > { %1684 = vmatmul.mubr.msk.bf16.vlgmr.msra.gmra.mrb[16].mxu0 %vm500_vm4, %v751_v9 }
 0x207   : > { %1694 = vmatpush3.bf16.msra.mxu0 %v2022_v14  ;;  %1695 = vmatprep.mubr.msk.bf16.mxu0 %vm1885_vm0, %v1884_v1 }
 0x208   : > { %1705 = vmatprep.subr.bf16.mxu0 %v1884_v1 }
 0x2cb   : > { %v744_v10 = vpop.f32.mrb[12].mxu1 }
 0x2cc   : > { %v1679_v11 = vpop.f32.mrb[13].mxu1 }
 0x2cd   : > { %v747_v12 = vpop.f32.mrb[14].mxu1 }
 0x2ce   : > { %v1680_v13 = vpop.f32.mrb[15].mxu1 }
 0x2d1   : > { %v702_v16 = vpop.f32.mrb[12].mxu0 }
 0x2d2   : > { %v745_v17 = vadd.f32 %v744_v10, %v702_v16  ;;  %v1673_v18 = vpop.f32.mrb[13].mxu0 }
 0x2d3   : > { %v705_v19 = vpop.f32.mrb[14].mxu0 }
 0x2d4   : > { %v1674_v20 = vpop.f32.mrb[15].mxu0 }
 0x2d9   : > { %v789_v21 = vpop.f32.mrb[16].mxu0 }
 0x2da   : > { %v795_v22 = vadd.f32 %v789_v21, %v745_v17  ;;  %v1685_v23 = vpop.f32.mrb[17].mxu0 }
 0x2db   : > { %v792_v24 = vpop.f32.mrb[18].mxu0 }
 0x2dc   : > { %v796_v25 = vadd.f32 %v795_v22, %v2065_v56  ;;  %v1686_v26 = vpop.f32.mrb[19].mxu0 }
 0x2de   : > { %v798_v27 = vsel %vm797_vm5, %v796_v25, 0.0 }
 0x2df   : > { %v800_v28 = vrot.slane %v798_v27, 1  ;;  %v803_v30 = vrot.slane %v798_v27, 2 }
 0x2e1   : > { %v802_v29 = vmax.f32 %v798_v27, %v800_v28 }
 0x2e3   : > { %v805_v31 = vmax.f32 %v802_v29, %v803_v30 }
 0x2e5   : > { %v807_v32 = vrot.slane %v805_v31, 1  ;;  %v809_v33 = vrot.slane %v805_v31, 2 }
 0x2e7   : > { %v811_v34 = vsel %vm481_vm2, %v805_v31, %v807_v32 }
 0x2e8   : > { %v2088_v35 = vsel %vm812_vm6, %v811_v34, %v809_v33 }
 0x2e9   : > { %v815_v36 = vrot.slane %v2088_v35, 7 }
 0x2eb   : > { %v817_v37 = vsel %vm481_vm2, 0.0, %v815_v36 }
 0x2ec   : > { %v819_v38 = vsel %vm818_vm7, %v817_v37, 0.0 }
 0x2ed   : > { %v820_v39 = vmax.f32 %v819_v38, 0.0 }
 0x2ef   : > { %v821_v41 = vpack.c.bf16 %v820_v39, %v820_v39 }
 0x2f1   : > { %1696 = vmatmul.mubr.msk.bf16.vlgmr.msra.gmra.mrb[20].mxu0 %vm500_vm4, %v821_v41  ;;  %v825_v42 = vshll.u32 %v821_v41, 16  ;;  %v823_v43 = vshrl.u32 %v821_v41, 16  ;;  %v915_v47 = vrot.slane %v821_v41, 1 }
 0x2f2   : > { %1706 = vmatpush3.bf16.msra.mxu0 %v2028_v15  ;;  %1707 = vmatprep.mubr.msk.bf16.mxu0 %vm1885_vm0, %v1884_v1 }
 0x2f3   : > { %v827_v44 = vrot.slane %v825_v42, 1  ;;  %1717 = vmatprep.subr.bf16.mxu0 %v1884_v1 }
 0x2f5   : > { %v828_v46 = vor.u32 %v827_v44, %v823_v43 }
 0x2f7   : > { %1690 = vmatmul.mubr.msk.bf16.vlgmr.msra.gmra.mrb[16].mxu1 %vm500_vm4, %v828_v46 }
 0x2f8   : > { %1700 = vmatpush3.bf16.msra.mxu1 %v2046_v40  ;;  %1701 = vmatprep.mubr.msk.bf16.mxu1 %vm1885_vm0, %v1884_v1 }
 0x2f9   : > { %1711 = vmatprep.subr.bf16.mxu1 %v1884_v1 }
 0x2ff   : > { %1702 = vmatmul.mubr.msk.bf16.vlgmr.msra.gmra.mrb[20].mxu1 %vm500_vm4, %v915_v47 }
 0x300   : > { %1712 = vmatpush3.bf16.msra.mxu1 %v2022_v14  ;;  %1713 = vmatprep.mubr.msk.bf16.mxu1 %vm1885_vm0, %v1884_v1 }
 0x301   : > { %1723 = vmatprep.subr.bf16.mxu1 %v1884_v1 }
 0x3c4   : > { %v908_v48 = vpop.f32.mrb[20].mxu0 }
 0x3c5   : > { %v1697_v49 = vpop.f32.mrb[21].mxu0 }
 0x3c6   : > { %v911_v50 = vpop.f32.mrb[22].mxu0 }
 0x3c7   : > { %v1698_v51 = vpop.f32.mrb[23].mxu0 }
 0x3ca   : > { %v866_v52 = vpop.f32.mrb[16].mxu1 }
 0x3cb   : > { %v909_v53 = vadd.f32 %v908_v48, %v866_v52  ;;  %v1691_v54 = vpop.f32.mrb[17].mxu1 }
 0x3cc   : > { %v869_v57 = vpop.f32.mrb[18].mxu1 }
 0x3cd   : > { %v1692_v58 = vpop.f32.mrb[19].mxu1 }
 0x3d2   : > { %v953_v59 = vpop.f32.mrb[20].mxu1 }
 0x3d3   : > { %v959_v60 = vadd.f32 %v953_v59, %v909_v53  ;;  %v1703_v61 = vpop.f32.mrb[21].mxu1 }
 0x3d4   : > { %v956_v62 = vpop.f32.mrb[22].mxu1 }
 0x3d5   : > { %v960_v63 = vadd.f32 %v959_v60, %v2065_v56  ;;  %v1704_v0 = vpop.f32.mrb[23].mxu1 }
 0x3d7   : > { %v962_v2 = vrot.slane %v960_v63, 7 }
 0x3d9   : > { %v964_v3 = vsel %vm481_vm2, 0.0, %v962_v2  ;;  %v1815_v2 = vld [vmem:[%s2223_s5] sm:$0xff]  }
 0x3da   : > { %v965_v4 = vsel %vm818_vm7, %v964_v3, 0.0 }
 0x3db   : > { %v966_v5 = vmax.f32 %v965_v4, 0.0 }
 0x3dd   : > { %v967_v6 = vpack.c.bf16 %v966_v5, %v966_v5 }
 0x3df   : > { %1714 = vmatmul.mubr.msk.bf16.vlgmr.msra.gmra.mrb[24].mxu1 %vm500_vm4, %v967_v6  ;;  %v971_v7 = vshll.u32 %v967_v6, 16  ;;  %v969_v8 = vshrl.u32 %v967_v6, 16  ;;  %v1061_v11 = vrot.slane %v967_v6, 1 }
 0x3e0   : > { %1724 = vmatpush3.bf16.msra.mxu1 %v2028_v15  ;;  %1725 = vmatprep.mubr.msk.bf16.mxu1 %vm1885_vm0, %v1884_v1 }
 0x3e1   : > { %v973_v9 = vrot.slane %v971_v7, 1  ;;  %1735 = vmatprep.subr.bf16.mxu1 %v1884_v1 }
 0x3e3   : > { %v974_v10 = vor.u32 %v973_v9, %v969_v8 }
 0x3e5   : > { %1708 = vmatmul.mubr.msk.bf16.vlgmr.msra.gmra.mrb[24].mxu0 %vm500_vm4, %v974_v10 }
 0x3e6   : > { %1718 = vmatpush3.bf16.msra.mxu0 %v2046_v40  ;;  %1719 = vmatprep.mubr.msk.bf16.mxu0 %vm1885_vm0, %v1884_v1 }
 0x3e7   : > { %1729 = vmatprep.subr.bf16.mxu0 %v1884_v1 }
 0x3ed   : > { %1720 = vmatmul.mubr.msk.bf16.vlgmr.msra.gmra.mrb[28].mxu0 %vm500_vm4, %v1061_v11 }
 0x3ee   : > { %1730 = vmatpush3.bf16.msra.mxu0 %v2022_v14  ;;  %1731 = vmatprep.mubr.msk.bf16.mxu0 %vm1885_vm0, %v1884_v1 }
 0x3ef   : > { %1741 = vmatprep.subr.bf16.mxu0 %v1884_v1 }
 0x4b2   : > { %v1054_v12 = vpop.f32.mrb[24].mxu1 }
 0x4b3   : > { %v1715_v13 = vpop.f32.mrb[25].mxu1 }
 0x4b4   : > { %v1057_v16 = vpop.f32.mrb[26].mxu1 }
 0x4b5   : > { %v1716_v17 = vpop.f32.mrb[27].mxu1 }
 0x4b8   : > { %v1012_v18 = vpop.f32.mrb[24].mxu0 }
 0x4b9   : > { %v1055_v19 = vadd.f32 %v1054_v12, %v1012_v18  ;;  %v1709_v20 = vpop.f32.mrb[25].mxu0 }
 0x4ba   : > { %v1015_v21 = vpop.f32.mrb[26].mxu0  ;;  %v1456_v20 = vand.u32 127, %v645_v45 }
 0x4bb   : > { %v1710_v22 = vpop.f32.mrb[27].mxu0  ;;  %v1405_v21 = vld [vmem:[%s2224_s6] sm:$0x1] }
 0x4bc   : > { %vm1457_vm9 = vcmp.lt.s32.totalorder %v1456_v20, 4 }
 0x4c0   : > { %v1099_v23 = vpop.f32.mrb[28].mxu0 }
 0x4c1   : > { %v1105_v24 = vadd.f32 %v1099_v23, %v1055_v19  ;;  %v1721_v25 = vpop.f32.mrb[29].mxu0 }
 0x4c2   : > { %v1102_v26 = vpop.f32.mrb[30].mxu0 }
 0x4c3   : > { %v1106_v27 = vadd.f32 %v1105_v24, %v2065_v56  ;;  %v1722_v28 = vpop.f32.mrb[31].mxu0 }
 0x4c5   : > { %v1107_v29 = vadd.f32 %v1106_v27, %v2088_v35 }
 0x4c7   : > { %v1109_v30 = vsel %vm1108_vm8, %v1107_v29, 0.0 }
 0x4c8   : > { %v1111_v31 = vrot.slane %v1109_v30, 1  ;;  %v1114_v33 = vrot.slane %v1109_v30, 2 }
 0x4ca   : > { %v1113_v32 = vmax.f32 %v1109_v30, %v1111_v31 }
 0x4cc   : > { %v2128_v34 = vmax.f32 %v1113_v32, %v1114_v33 }
 0x4ce   : > { %v1118_v36 = vrot.slane %v2128_v34, 7 }
 0x4d0   : > { %v1120_v37 = vsel %vm481_vm2, 0.0, %v1118_v36 }
 0x4d1   : > { %v1121_v38 = vsel %vm812_vm6, %v1120_v37, 0.0 }
 0x4d2   : > { %v1122_v39 = vmax.f32 %v1121_v38, 0.0 }
 0x4d4   : > { %v1123_v41 = vpack.c.bf16 %v1122_v39, %v1122_v39 }
 0x4d6   : > { %1732 = vmatmul.mubr.msk.bf16.vlgmr.msra.gmra.mrb[32].mxu0 %vm500_vm4, %v1123_v41  ;;  %v1125_v56 = vshrl.u32 %v1123_v41, 16  ;;  %v1213_v35 = vrot.slane %v1123_v41, 1 }
 0x4d7   : > { %1742 = vmatpush3.bf16.msra.mxu0 %v2028_v15  ;;  %1743 = vmatprep.mubr.msk.bf16.mxu0 %vm1885_vm0, %v1884_v1 }
 0x4d8   : > { %1726 = vmatmul.mubr.msk.bf16.vlgmr.msra.gmra.mrb[28].mxu1 %vm500_vm4, %v1125_v56  ;;  %1753 = vmatprep.subr.bf16.mxu0 %v1884_v1 }
 0x4d9   : > { %1736 = vmatpush3.bf16.msra.mxu1 %v2046_v40  ;;  %1737 = vmatprep.mubr.msk.bf16.mxu1 %vm1885_vm0, %v1884_v1 }
 0x4da   : > { %1747 = vmatprep.subr.bf16.mxu1 %v1884_v1 }
 0x4e0   : > { %1738 = vmatmul.mubr.msk.bf16.vlgmr.msra.gmra.mrb[32].mxu1 %vm500_vm4, %v1213_v35 }
 0x4e1   : > { %1748 = vmatpush3.bf16.msra.mxu1 %v2022_v14  ;;  %1749 = vmatprep.mubr.msk.bf16.mxu1 %vm1885_vm0, %v1884_v1 }
 0x4e2   : > { %1759 = vmatprep.subr.bf16.mxu1 %v1884_v1 }
 0x5a9   : > { %v1206_v15 = vpop.f32.mrb[32].mxu0 }
 0x5aa   : > { %v1733_v42 = vpop.f32.mrb[33].mxu0 }
 0x5ab   : > { %v1164_v43 = vpop.f32.mrb[28].mxu1  ;;  %v1209_v44 = vpop.f32.mrb[34].mxu0 }
 0x5ac   : > { %v1207_v46 = vadd.f32 %v1206_v15, %v1164_v43  ;;  %v1727_v47 = vpop.f32.mrb[29].mxu1  ;;  %v1734_v48 = vpop.f32.mrb[35].mxu0 }
 0x5ad   : > { %v1167_v49 = vpop.f32.mrb[30].mxu1 }
 0x5ae   : > { %v1728_v50 = vpop.f32.mrb[31].mxu1 }
 0x5b3   : > { %v1251_v51 = vpop.f32.mrb[32].mxu1 }
 0x5b4   : > { %v1257_v52 = vadd.f32 %v1251_v51, %v1207_v46  ;;  %v1739_v53 = vpop.f32.mrb[33].mxu1 }
 0x5b5   : > { %v1254_v54 = vpop.f32.mrb[34].mxu1 }
 0x5b6   : > { %v1258_v14 = vadd.f32 %v1257_v52, %v2062_v55  ;;  %v1740_v57 = vpop.f32.mrb[35].mxu1 }
 0x5b8   : > { %v1260_v58 = vrot.slane %v1258_v14, 7 }
 0x5ba   : > { %v1262_v59 = vsel %vm481_vm2, 0.0, %v1260_v58 }
 0x5bb   : > { %v1263_v60 = vsel %vm812_vm6, %v1262_v59, 0.0 }
 0x5bc   : > { %v1264_v61 = vmax.f32 %v1263_v60, 0.0 }
 0x5be   : > { %v1265_v62 = vpack.c.bf16 %v1264_v61, %v1264_v61 }
 0x5c0   : > { %v1267_v63 = vshrl.u32 %v1265_v62, 16  ;;  %1750 = vmatmul.mubr.msk.bf16.vlgmr.msra.gmra.mrb[36].mxu1 %vm500_vm4, %v1265_v62  ;;  %v1355_v0 = vrot.slane %v1265_v62, 1 }
 0x5c1   : > { %1761 = vmatprep.mubr.msk.bf16.mxu1 %vm1885_vm0, %v1884_v1  ;;  %1760 = vmatpush3.bf16.msra.mxu1 %v1815_v2 }
 0x5c2   : > { %1744 = vmatmul.mubr.msk.bf16.vlgmr.msra.gmra.mrb[36].mxu0 %vm500_vm4, %v1267_v63 }
 0x5c3   : > { %1754 = vmatpush3.bf16.msra.mxu0 %v2046_v40  ;;  %1755 = vmatprep.mubr.msk.bf16.mxu0 %vm1885_vm0, %v1884_v1 }
 0x5ca   : > { %1756 = vmatmul.mubr.msk.bf16.vlgmr.msra.gmra.mrb[40].mxu0 %vm500_vm4, %v1355_v0 }
 0x693   : > { %v1348_v3 = vpop.f32.mrb[36].mxu1 }
 0x694   : > { %v1751_v4 = vpop.f32.mrb[37].mxu1 }
 0x695   : > { %v1306_v5 = vpop.f32.mrb[36].mxu0  ;;  %v1351_v6 = vpop.f32.mrb[38].mxu1 }
 0x696   : > { %v1349_v7 = vadd.f32 %v1348_v3, %v1306_v5  ;;  %v1745_v8 = vpop.f32.mrb[37].mxu0  ;;  %v1752_v9 = vpop.f32.mrb[39].mxu1 }
 0x697   : > { %v1309_v10 = vpop.f32.mrb[38].mxu0 }
 0x698   : > { %v1746_v40 = vpop.f32.mrb[39].mxu0 }
 0x69d   : > { %v1393_v11 = vpop.f32.mrb[40].mxu0 }
 0x69e   : > { %v1399_v12 = vadd.f32 %v1393_v11, %v1349_v7  ;;  %v1757_v1 = vpop.f32.mrb[41].mxu0 }
 0x69f   : > { %v1396_v13 = vpop.f32.mrb[42].mxu0 }
 0x6a0   : > { %v1400_v16 = vadd.f32 %v1399_v12, %v2062_v55  ;;  %v1758_v17 = vpop.f32.mrb[43].mxu0 }
 0x6a2   : > { %v1401_v18 = vadd.f32 %v1400_v16, %v2128_v34 }
 0x6a4   : > { %v1402_v19 = vpack.c.bf16 %v1401_v18, %v1401_v18 }
 0x6a6   : > { %1762 = vmatmul.mubr.msk.bf16.vlgmr.msra.gmra.mrb[40].mxu1 %vm500_vm4, %v1402_v19 }
 0x779   : > { %v1449_v22 = vpop.f32.mrb[40].mxu1 }
 0x77a   : > { %v1450_v23 = vadd.f32 %v1449_v22, %v1405_v21  ;;  %v1763_v24 = vpop.f32.mrb[41].mxu1 }
 0x77b   : > { %v1452_v25 = vpop.f32.mrb[42].mxu1 }
 0x77c   : > { %v1764_v55 = vpop.f32.mrb[43].mxu1  ;;  %v1458_v26 = vsel %vm1457_vm9, %v1450_v23, -1e+30 }
 0x77d   : > { %v1459_v27 = vsel %vm481_vm2, %v1458_v26, -inf }
 0x77e   : > { %1460 = vmax.xlane.f32.xlu0 %v1459_v27 }
 0x80b   : > { %v1461_v28 = vpop.xlane.xlu0 %1460 }
 0x80c   : > { %v1462_v29 = vsub.f32 %v1458_v26, %v1461_v28 }
 0x80e   : > { %v1463_v30 = vmul.f32 1.442695, %v1462_v29 }
 0x810   : > { %1816 = vpow2.f32 %v1463_v30 }
 0x81a   : > { %v1817_v45 = vpop.eup %1816 }
 0x81b   : > { %v1465_v31 = vsel %vm481_vm2, %v1817_v45, 0.0 }
 0x81c   : > { %1466 = vadd.xlane.f32.xlu0 %v1465_v31 }
 0x8a9   : > { %v1467_v32 = vpop.xlane.xlu0 %1466 }
 0x8aa   : > { %1818 = vrcp.f32 %v1467_v32 }
 0x8b4   : > { %v1819_v33 = vpop.eup %1818 }
 0x8b5   : > { %v1469_v34 = vmul.f32 %v1819_v33, %v1817_v45 }
 0x8b7   : > { %1470 = vst [vmem:[%s268_s18] sm:$0x1] %v1469_v34 }
 0x8b8   : > { %1833 = shalt.err (!%p1830_p3)
}
 0x8b9   : > { %s1834_s13 = scalar_lea.hbm %s2176_s22, 16  ;;  %s1838_s16 = scalar_lea.hbm %s2225_s7, 32 }
 0x8ba   : > { %p1835_p4 = scmp.ne.s32.totalorder %s2176_s22, %s1834_s13  ;;  %p1839_p9 = scmp.lt.u32.totalorder %s2176_s22, %s2225_s7 }
 0x8bb   : > { %p1840_p10 = scmp.lt.u32.totalorder %s1838_s16, %s1834_s13  ;;  %p1842_p12 = scmp.lt.u32.totalorder %s1834_s13, %s2176_s22 }
 0x8bc   : > { %p1836_p7 = pnand %p1835_p4, %p1965_p5 }
 0x8bd   : > { %p1841_p11 = por %p1840_p10, %p1839_p9 }
 0x8be   : > { %p1837_p8 = pneg %p1836_p7 }
 0x8bf   : > { %p1843_p13 = por %p1842_p12, %p1841_p11 }
 0x8c1   : > { %p1844_p0 = pnand %p1843_p13, %p1837_p8 }
 0x8c3   : > { %1847 = shalt.err (!%p1844_p0)
}
 0x8c4   : > { %1765 = dma.vmem_to_hbm [thread:$0]  (%p1965_p5), %s2178_s19, 16, %s2176_s22, %s1472_s23  }
 0x8c5 PF: > { %p1771_p1 = scmp.ge.s32.totalorder %s1882_s27, 2  ;;  %s1496_s20 = sand.u32 1, %s1870_s24  }
 0x8c6   : > { %s1497_s21 = scalar_lea.sflag [#allocation3], %s1496_s20 }
 0x8c7   : > { %p1768_p2 = pnand %p1771_p1, %p1969_p6 }
 0x8c9   : > { %1865 = dma.done.wait (!%p1768_p2), %s1497_s21, 16  }
 0x8ca   : > { %1867 = vsyncadd (!%p1768_p2), %s1497_s21, 4294967280  ;;  %p17_p3 = scmp.ge.s32.totalorder %s1952_s30, 4   ;;  %s2228_s24 = smov %s1874_s25 }
 0x8cb   : > { %s2229_s25 = smov %s1878_s26  ;;  %s2230_s26 = smov %s1963_s10 }
 0x8cc   : > { %s2231_s27 = smov %s1952_s30  ;;  %19 = sbr.rel (!%p17_p3) target bundleno = 3 (0x3), region = 83 }
 0x8d3   :  { %1501 = vsyncpa [#allocation3], 1 }
 0x8d4   :  { %1503 = vsyncpa [#allocation3 + $0x1], 1 }

// kernel: tpu_custom_call.1
= control target key start
LH: loop header
LB: loop body
LE: loop exit
PB: predicated region body
PF: predicated region fallthrough
CT: control target
= control target key end

     0   :  { %12 = vsyncpa [#allocation3], 0  ;;  %s2218_s0 = inlined_call_operand.vmem [shape: f32[2,8,32], index: 0, kind: input, shape index: {}]   ;;  %s2219_s1 = inlined_call_operand.vmem [shape: bf16[3,32,16], index: 1, kind: input, shape index: {}]   ;;  %s2220_s2 = inlined_call_operand.vmem [shape: f32[1,16], index: 2, kind: input, shape index: {}]   ;;  %s2221_s3 = inlined_call_operand.vmem [shape: bf16[3,16,16], index: 3, kind: input, shape index: {}]   ;;  %s2222_s4 = inlined_call_operand.vmem [shape: f32[1,16], index: 4, kind: input, shape index: {}]   ;;  %s2223_s5 = inlined_call_operand.vmem [shape: bf16[16,128], index: 5, kind: input, shape index: {}]   ;;  %s2224_s6 = inlined_call_operand.vmem [shape: f32[1,128], index: 6, kind: input, shape index: {}]   ;;  %s2225_s7 = inlined_call_operand.hbm [shape: f32[2,1,128], index: 7, kind: output, shape index: {}]  }
   0x1   :  { %14 = vsyncpa [#allocation3 + $0x1], 0  ;;  %s1927_s24 = smov 0   ;;  %s1929_s25 = smov 0  }
   0x2   :  { %s1931_s26 = smov 0   ;;  %s1933_s27 = smov 0  }
   0x3 LB: > { %s1948_s28 = sadd.s32 4294967295, %s1882_s27   ;;  %s1539_s29 = sadd.s32 4294967294, %s1882_s27   ;;  %s1882_s27 = sphi %s1933_s27, %s2231_s27   ;;  %s1878_s26 = sphi %s1931_s26, %s2230_s26   ;;  %s1874_s25 = sphi %s1929_s25, %s2229_s25   ;;  %s1870_s24 = sphi %s1927_s24, %s2228_s24  }
   0x4   : > { %s1952_s30 = sadd.s32 1, %s1882_s27   ;;  %s179_s8 = sadd.s32 1, %s1878_s26 }
   0x5   : > { %s176_s9 = ssub.s32 %s1882_s27, %s1952_s30  ;;  %p189_p0 = scmp.ne.s32.totalorder %s1878_s26, %s1874_s25 }
   0x6   : > { %p177_p1 = scmp.eq.s32.totalorder %s176_s9, 0  ;;  %p190_p2 = scmp.eq.s32.totalorder %s1948_s28, 1 }
   0x7   : > { %p195_p3 = scmp.ne.s32.totalorder %s1874_s25, %s1870_s24  ;;  %p196_p4 = scmp.eq.s32.totalorder %s1539_s29, 1 }
   0x8   : > { %s1963_s10 = scalar_select %p177_p1, %s1878_s26, %s179_s8  }
   0x9   : > { %p1965_p5 = por %p190_p2, %p189_p0  ;;  %p1969_p6 = por %p196_p4, %p195_p3 }
   0xa   : > { %p1542_p7 = scmp.ge.s32.totalorder %s1882_s27, 1  ;;  %p239_p8 = scmp.lt.s32.totalorder %s1882_s27, 3 }
   0xc   : > { %p240_p9 = pnand %p1542_p7, %p239_p8 }
   0xd   : > { %v1806_v0 = vld [vmem:[%s2219_s1 + $0x10] sm:$0xff] (!%p240_p9)   ;;  %v1884_v1 = vmov (!%p240_p9), 0.0   ;;  %v1807_v2 = vld [vmem:[%s2219_s1] sm:$0xff] (!%p240_p9)   ;;  %v1808_v3 = vld [vmem:[%s2219_s1 + $0x18] sm:$0xff] (!%p240_p9)   ;;  %vm1885_vm0 = vmmov (!%p240_p9), 0   ;;  %p269_p10 = scmp.lt.s32.totalorder (!%p240_p9), %s1948_s28, 1  ;;  %v645_v45 = vlaneseq (!%p240_p9) }
   0xe   : > { %243 = sbr.rel (%p240_p9) target bundleno = 2245 (0x8c5), region = 48  ;;  %1627 = vmatprep.subr.bf16.mxu0 (!%p240_p9), %v1884_v1  ;;  %1635 = vmatprep.subr.bf16.mxu1 (!%p240_p9), %v1884_v1  ;;  %v1809_v4 = vld [vmem:[%s2219_s1 + $0x8] sm:$0xff] (!%p240_p9)   ;;  %vm315_vm1 = vcmask (!%p240_p9), 261120   ;;  %v1810_v10 = vld [vmem:[%s2219_s1 + $0x20] sm:$0xff] (!%p240_p9)   ;;  %vm481_vm2 = vcmask (!%p240_p9), 1040384   ;;  %vm483_vm3 = vcmask (!%p240_p9), 1046528  }
   0xf   : > { %1628 = vmatpush3.bf16.msra.mxu0 (!%p240_p9), %v1806_v0  ;;  %1631 = vmatprep.mubr.msk.bf16.mxu0 (!%p240_p9), %vm1885_vm0, %v1884_v1  ;;  %v1811_v12 = vld [vmem:[%s2219_s1 + $0x28] sm:$0xff] (!%p240_p9)   ;;  %v2022_v14 = vld [vmem:[%s2221_s3] sm:$0xff] (!%p240_p9)   ;;  %vm500_vm4 = vcmask (!%p240_p9), 130048   ;;  %v2046_v40 = vld [vmem:[%s2221_s3 + $0x10] sm:$0xff] (!%p240_p9)   ;;  %v646_v48 = vshrl.u32 (!%p240_p9), %v645_v45, 7  ;;  %vm797_vm5 = vcmask (!%p240_p9), 1045504  }
  0x10   : > { %1636 = vmatpush3.bf16.msra.mxu1 (!%p240_p9), %v1807_v2  ;;  %1629 = vmatprep.subr.bf16.mxu0 (!%p240_p9), %v1884_v1  ;;  %v2028_v15 = vld [vmem:[%s2221_s3 + $0x8] sm:$0xff] (!%p240_p9)   ;;  %v1553_v25 = vld [vmem:[%s2220_s2] ss:$0 sm:$0xff] (!%p240_p9)  ;;  %vm812_vm6 = vcmask (!%p240_p9), 1041408   ;;  %vm818_vm7 = vcmask (!%p240_p9), 1043456   ;;  %vm1108_vm8 = vcmask (!%p240_p9), 1042432  }
  0x11   : > { %1637 = vmatprep.subr.bf16.mxu1 (!%p240_p9), %v1884_v1  ;;  %1639 = vmatprep.mubr.msk.bf16.mxu1 (!%p240_p9), %vm1885_vm0, %v1884_v1  ;;  %v647_v54 = vsub.s32 (!%p240_p9), 0, %v646_v48  ;;  %v2062_v55 = vld [vmem:[%s2222_s4] sm:$0x1] (!%p240_p9)  ;;  %s267_s16 = sand.u32 (!%p240_p9), 1, %s1874_s25   ;;  %s1577_s17 = sshll.u32 (!%p240_p9), %s1948_s28, 4 }
  0x12   : > { %s268_s18 = scalar_lea.vmem (!%p240_p9), [#allocation2], %s267_s16  ;;  %s1472_s23 = scalar_lea.sflag (!%p240_p9), [#allocation3], %s267_s16 }
  0x13   : > { %1630 = vmatpush3.bf16.msra.mxu0 (!%p240_p9), %v1808_v3  ;;  %v2065_v56 = vrot.slane (!%p240_p9), %v2062_v55, %v647_v54  ;;  %s1484_s19 = sshll.u32 (!%p240_p9), %s268_s18, 4  ;;  %s2178_s19 = int_to_ptr.vmem [resolvable:$true] %s1484_s19 }
  0x14   : > { %1638 = vmatpush3.bf16.msra.mxu1 (!%p240_p9), %v1809_v4  ;;  %1643 = vmatprep.subr.bf16.mxu0 (!%p240_p9), %v1884_v1  ;;  %s1820_s29 = scalar_lea.vmem (!%p240_p9), %s2178_s19, 16 }
  0x15   : > { %s270_s21 = scalar_select %p269_p10, %s1948_s28, 1  ;;  %1651 = vmatprep.subr.bf16.mxu1 %v1884_v1 }
  0x16   : > { %p1821_p11 = scmp.ne.s32.totalorder %s2178_s19, %s1820_s29  ;;  %s1886_s28 = smov [#allocation2]  }
  0x17   : > { %s1543_s22 = sshll.u32 %s270_s21, 3 }
  0x18   : > { %s272_s8 = scalar_lea.vmem %s2218_s0, %s1543_s22  ;;  %s2176_s22 = scalar_lea.hbm %s2225_s7, %s1577_s17 }
  0x19   : > { %v294_v5 = vld [vmem:[%s272_s8] sm:$0xff]  ;;  %p1822_p12 = pnand %p1821_p11, %p1965_p5  ;;  %s1824_s8 = sshll.u32 %s1886_s28, 4  ;;  %s1825_s8 = int_to_ptr.vmem [resolvable:$false] %s1824_s8 }
  0x1a   : > { %v295_v6 = vpack.c.bf16 %v294_v5, %v294_v5  ;;  %s1826_s9 = scalar_lea.vmem %s1825_s8, 32  ;;  %p1827_p0 = scmp.lt.s32.totalorder %s2178_s19, %s1825_s8 }
  0x1b   : > { %p1823_p13 = pneg %p1822_p12  ;;  %p1828_p1 = scmp.lt.s32.totalorder %s1826_s9, %s1820_s29 }
  0x1c   : > { %v297_v7 = vshrl.u32 %v295_v6, 16  ;;  %v299_v8 = vshll.u32 %v295_v6, 16  ;;  %1640 = vmatmul.mubr.msk.bf16.vlgmr.msra.gmra.mrb[0].mxu1 %vm315_vm1, %v295_v6  ;;  %v414_v13 = vrot.slane %v295_v6, 1 }
  0x1d   : > { %1653 = vmatprep.mubr.msk.bf16.mxu1 %vm1885_vm0, %v1884_v1  ;;  %1652 = vmatpush3.bf16.msra.mxu1 %v2028_v15  ;;  %p1829_p2 = por %p1828_p1, %p1827_p0 }
  0x1e   : > { %v301_v9 = vrot.slane %v299_v8, 1  ;;  %1663 = vmatprep.subr.bf16.mxu1 %v1884_v1 }
  0x1f   : > { %p1830_p3 = pnand %p1829_p2, %p1823_p13 }
  0x20   : > { %v302_v11 = vor.u32 %v301_v9, %v297_v7 }
  0x22   : > { %1632 = vmatmul.mubr.msk.bf16.vlgmr.msra.gmra.mrb[0].mxu0 %vm315_vm1, %v302_v11 }
  0x23   : > { %1644 = vmatpush3.bf16.msra.mxu0 %v1810_v10  ;;  %1647 = vmatprep.mubr.msk.bf16.mxu0 %vm1885_vm0, %v1884_v1 }
  0x24   : > { %1645 = vmatprep.subr.bf16.mxu0 %v1884_v1 }
  0x27   : > { %1646 = vmatpush3.bf16.msra.mxu0 %v1811_v12 }
  0x28   : > { %1657 = vmatprep.subr.bf16.mxu0 %v1884_v1 }
  0x2a   : > { %1648 = vmatmul.mubr.msk.bf16.vlgmr.msra.gmra.mrb[4].mxu0 %vm315_vm1, %v414_v13 }
  0x2b   : > { %1659 = vmatprep.mubr.msk.bf16.mxu0 %vm1885_vm0, %v1884_v1  ;;  %1658 = vmatpush3.bf16.msra.mxu0 %v2022_v14 }
  0x2c   : > { %1669 = vmatprep.subr.bf16.mxu0 %v1884_v1 }
  0xef   : > { %v407_v16 = vpop.f32.mrb[0].mxu1 }
  0xf0   : > { %v1641_v17 = vpop.f32.mrb[1].mxu1 }
  0xf1   : > { %v410_v18 = vpop.f32.mrb[2].mxu1 }
  0xf2   : > { %v1642_v19 = vpop.f32.mrb[3].mxu1 }
  0xf5   : > { %v353_v20 = vpop.f32.mrb[0].mxu0 }
  0xf6   : > { %v408_v21 = vadd.f32 %v407_v16, %v353_v20  ;;  %v1633_v22 = vpop.f32.mrb[1].mxu0 }
  0xf7   : > { %v356_v23 = vpop.f32.mrb[2].mxu0 }
  0xf8   : > { %v1634_v24 = vpop.f32.mrb[3].mxu0 }
  0xfd   : > { %v464_v26 = vpop.f32.mrb[4].mxu0 }
  0xfe   : > { %v470_v27 = vadd.f32 %v464_v26, %v408_v21  ;;  %v1649_v28 = vpop.f32.mrb[5].mxu0 }
  0xff   : > { %v467_v29 = vpop.f32.mrb[6].mxu0 }
 0x100   : > { %v477_v30 = vadd.f32 %v1553_v25, %v470_v27  ;;  %v1650_v31 = vpop.f32.mrb[7].mxu0 }
 0x102   : > { %v479_v32 = vrot.slane %v477_v30, 7 }
 0x104   : > { %v482_v33 = vsel %vm481_vm2, 0.0, %v479_v32 }
 0x105   : > { %v484_v34 = vsel %vm483_vm3, %v482_v33, 0.0 }
 0x106   : > { %v485_v35 = vmax.f32 %v484_v34, 0.0 }
 0x108   : > { %v486_v36 = vpack.c.bf16 %v485_v35, %v485_v35 }
 0x10a   : > { %1660 = vmatmul.mubr.msk.bf16.vlgmr.msra.gmra.mrb[8].mxu0 %vm500_vm4, %v486_v36  ;;  %v490_v37 = vshll.u32 %v486_v36, 16  ;;  %v488_v38 = vshrl.u32 %v486_v36, 16  ;;  %v593_v42 = vrot.slane %v486_v36, 1 }
 0x10b   : > { %1670 = vmatpush3.bf16.msra.mxu0 %v2028_v15  ;;  %1671 = vmatprep.mubr.msk.bf16.mxu0 %vm1885_vm0, %v1884_v1 }
 0x10c   : > { %v492_v39 = vrot.slane %v490_v37, 1  ;;  %1681 = vmatprep.subr.bf16.mxu0 %v1884_v1 }
 0x10e   : > { %v493_v41 = vor.u32 %v492_v39, %v488_v38 }
 0x110   : > { %1654 = vmatmul.mubr.msk.bf16.vlgmr.msra.gmra.mrb[4].mxu1 %vm500_vm4, %v493_v41 }
 0x111   : > { %1664 = vmatpush3.bf16.msra.mxu1 %v2046_v40  ;;  %1665 = vmatprep.mubr.msk.bf16.mxu1 %vm1885_vm0, %v1884_v1 }
 0x112   : > { %1675 = vmatprep.subr.bf16.mxu1 %v1884_v1 }
 0x118   : > { %1666 = vmatmul.mubr.msk.bf16.vlgmr.msra.gmra.mrb[8].mxu1 %vm500_vm4, %v593_v42 }
 0x119   : > { %1676 = vmatpush3.bf16.msra.mxu1 %v2022_v14  ;;  %1677 = vmatprep.mubr.msk.bf16.mxu1 %vm1885_vm0, %v1884_v1 }
 0x11a   : > { %1687 = vmatprep.subr.bf16.mxu1 %v1884_v1 }
 0x1dd   : > { %v586_v43 = vpop.f32.mrb[8].mxu0 }
 0x1de   : > { %v1661_v44 = vpop.f32.mrb[9].mxu0 }
 0x1df   : > { %v589_v46 = vpop.f32.mrb[10].mxu0 }
 0x1e0   : > { %v1662_v47 = vpop.f32.mrb[11].mxu0 }
 0x1e3   : > { %v538_v49 = vpop.f32.mrb[4].mxu1 }
 0x1e4   : > { %v587_v50 = vadd.f32 %v586_v43, %v538_v49  ;;  %v1655_v51 = vpop.f32.mrb[5].mxu1 }
 0x1e5   : > { %v541_v52 = vpop.f32.mrb[6].mxu1 }
 0x1e6   : > { %v1656_v53 = vpop.f32.mrb[7].mxu1 }
 0x1eb   : > { %v637_v57 = vpop.f32.mrb[8].mxu1 }
 0x1ec   : > { %v643_v58 = vadd.f32 %v637_v57, %v587_v50  ;;  %v1667_v59 = vpop.f32.mrb[9].mxu1 }
 0x1ed   : > { %v640_v60 = vpop.f32.mrb[10].mxu1 }
 0x1ee   : > { %v650_v61 = vadd.f32 %v2065_v56, %v643_v58  ;;  %v1668_v62 = vpop.f32.mrb[11].mxu1 }
 0x1f0   : > { %v652_v63 = vrot.slane %v650_v61, 7 }
 0x1f2   : > { %v654_v0 = vsel %vm481_vm2, 0.0, %v652_v63 }
 0x1f3   : > { %v655_v2 = vsel %vm483_vm3, %v654_v0, 0.0 }
 0x1f4   : > { %v656_v3 = vmax.f32 %v655_v2, 0.0 }
 0x1f6   : > { %v657_v4 = vpack.c.bf16 %v656_v3, %v656_v3 }
 0x1f8   : > { %1678 = vmatmul.mubr.msk.bf16.vlgmr.msra.gmra.mrb[12].mxu1 %vm500_vm4, %v657_v4  ;;  %v661_v5 = vshll.u32 %v657_v4, 16  ;;  %v659_v6 = vshrl.u32 %v657_v4, 16  ;;  %v751_v9 = vrot.slane %v657_v4, 1 }
 0x1f9   : > { %1688 = vmatpush3.bf16.msra.mxu1 %v2028_v15  ;;  %1689 = vmatprep.mubr.msk.bf16.mxu1 %vm1885_vm0, %v1884_v1 }
 0x1fa   : > { %v663_v7 = vrot.slane %v661_v5, 1  ;;  %1699 = vmatprep.subr.bf16.mxu1 %v1884_v1 }
 0x1fc   : > { %v664_v8 = vor.u32 %v663_v7, %v659_v6 }
 0x1fe   : > { %1672 = vmatmul.mubr.msk.bf16.vlgmr.msra.gmra.mrb[12].mxu0 %vm500_vm4, %v664_v8 }
 0x1ff   : > { %1682 = vmatpush3.bf16.msra.mxu0 %v2046_v40  ;;  %1683 = vmatprep.mubr.msk.bf16.mxu0 %vm1885_vm0, %v1884_v1 }
 0x200   : > { %1693 = vmatprep.subr.bf16.mxu0 %v1884_v1 }
 0x206   : > { %1684 = vmatmul.mubr.msk.bf16.vlgmr.msra.gmra.mrb[16].mxu0 %vm500_vm4, %v751_v9 }
 0x207   : > { %1694 = vmatpush3.bf16.msra.mxu0 %v2022_v14  ;;  %1695 = vmatprep.mubr.msk.bf16.mxu0 %vm1885_vm0, %v1884_v1 }
 0x208   : > { %1705 = vmatprep.subr.bf16.mxu0 %v1884_v1 }
 0x2cb   : > { %v744_v10 = vpop.f32.mrb[12].mxu1 }
 0x2cc   : > { %v1679_v11 = vpop.f32.mrb[13].mxu1 }
 0x2cd   : > { %v747_v12 = vpop.f32.mrb[14].mxu1 }
 0x2ce   : > { %v1680_v13 = vpop.f32.mrb[15].mxu1 }
 0x2d1   : > { %v702_v16 = vpop.f32.mrb[12].mxu0 }
 0x2d2   : > { %v745_v17 = vadd.f32 %v744_v10, %v702_v16  ;;  %v1673_v18 = vpop.f32.mrb[13].mxu0 }
 0x2d3   : > { %v705_v19 = vpop.f32.mrb[14].mxu0 }
 0x2d4   : > { %v1674_v20 = vpop.f32.mrb[15].mxu0 }
 0x2d9   : > { %v789_v21 = vpop.f32.mrb[16].mxu0 }
 0x2da   : > { %v795_v22 = vadd.f32 %v789_v21, %v745_v17  ;;  %v1685_v23 = vpop.f32.mrb[17].mxu0 }
 0x2db   : > { %v792_v24 = vpop.f32.mrb[18].mxu0 }
 0x2dc   : > { %v796_v25 = vadd.f32 %v795_v22, %v2065_v56  ;;  %v1686_v26 = vpop.f32.mrb[19].mxu0 }
 0x2de   : > { %v798_v27 = vsel %vm797_vm5, %v796_v25, 0.0 }
 0x2df   : > { %v800_v28 = vrot.slane %v798_v27, 1  ;;  %v803_v30 = vrot.slane %v798_v27, 2 }
 0x2e1   : > { %v802_v29 = vmax.f32 %v798_v27, %v800_v28 }
 0x2e3   : > { %v805_v31 = vmax.f32 %v802_v29, %v803_v30 }
 0x2e5   : > { %v807_v32 = vrot.slane %v805_v31, 1  ;;  %v809_v33 = vrot.slane %v805_v31, 2 }
 0x2e7   : > { %v811_v34 = vsel %vm481_vm2, %v805_v31, %v807_v32 }
 0x2e8   : > { %v2088_v35 = vsel %vm812_vm6, %v811_v34, %v809_v33 }
 0x2e9   : > { %v815_v36 = vrot.slane %v2088_v35, 7 }
 0x2eb   : > { %v817_v37 = vsel %vm481_vm2, 0.0, %v815_v36 }
 0x2ec   : > { %v819_v38 = vsel %vm818_vm7, %v817_v37, 0.0 }
 0x2ed   : > { %v820_v39 = vmax.f32 %v819_v38, 0.0 }
 0x2ef   : > { %v821_v41 = vpack.c.bf16 %v820_v39, %v820_v39 }
 0x2f1   : > { %1696 = vmatmul.mubr.msk.bf16.vlgmr.msra.gmra.mrb[20].mxu0 %vm500_vm4, %v821_v41  ;;  %v825_v42 = vshll.u32 %v821_v41, 16  ;;  %v823_v43 = vshrl.u32 %v821_v41, 16  ;;  %v915_v47 = vrot.slane %v821_v41, 1 }
 0x2f2   : > { %1706 = vmatpush3.bf16.msra.mxu0 %v2028_v15  ;;  %1707 = vmatprep.mubr.msk.bf16.mxu0 %vm1885_vm0, %v1884_v1 }
 0x2f3   : > { %v827_v44 = vrot.slane %v825_v42, 1  ;;  %1717 = vmatprep.subr.bf16.mxu0 %v1884_v1 }
 0x2f5   : > { %v828_v46 = vor.u32 %v827_v44, %v823_v43 }
 0x2f7   : > { %1690 = vmatmul.mubr.msk.bf16.vlgmr.msra.gmra.mrb[16].mxu1 %vm500_vm4, %v828_v46 }
 0x2f8   : > { %1700 = vmatpush3.bf16.msra.mxu1 %v2046_v40  ;;  %1701 = vmatprep.mubr.msk.bf16.mxu1 %vm1885_vm0, %v1884_v1 }
 0x2f9   : > { %1711 = vmatprep.subr.bf16.mxu1 %v1884_v1 }
 0x2ff   : > { %1702 = vmatmul.mubr.msk.bf16.vlgmr.msra.gmra.mrb[20].mxu1 %vm500_vm4, %v915_v47 }
 0x300   : > { %1712 = vmatpush3.bf16.msra.mxu1 %v2022_v14  ;;  %1713 = vmatprep.mubr.msk.bf16.mxu1 %vm1885_vm0, %v1884_v1 }
 0x301   : > { %1723 = vmatprep.subr.bf16.mxu1 %v1884_v1 }
 0x3c4   : > { %v908_v48 = vpop.f32.mrb[20].mxu0 }
 0x3c5   : > { %v1697_v49 = vpop.f32.mrb[21].mxu0 }
 0x3c6   : > { %v911_v50 = vpop.f32.mrb[22].mxu0 }
 0x3c7   : > { %v1698_v51 = vpop.f32.mrb[23].mxu0 }
 0x3ca   : > { %v866_v52 = vpop.f32.mrb[16].mxu1 }
 0x3cb   : > { %v909_v53 = vadd.f32 %v908_v48, %v866_v52  ;;  %v1691_v54 = vpop.f32.mrb[17].mxu1 }
 0x3cc   : > { %v869_v57 = vpop.f32.mrb[18].mxu1 }
 0x3cd   : > { %v1692_v58 = vpop.f32.mrb[19].mxu1 }
 0x3d2   : > { %v953_v59 = vpop.f32.mrb[20].mxu1 }
 0x3d3   : > { %v959_v60 = vadd.f32 %v953_v59, %v909_v53  ;;  %v1703_v61 = vpop.f32.mrb[21].mxu1 }
 0x3d4   : > { %v956_v62 = vpop.f32.mrb[22].mxu1 }
 0x3d5   : > { %v960_v63 = vadd.f32 %v959_v60, %v2065_v56  ;;  %v1704_v0 = vpop.f32.mrb[23].mxu1 }
 0x3d7   : > { %v962_v2 = vrot.slane %v960_v63, 7 }
 0x3d9   : > { %v964_v3 = vsel %vm481_vm2, 0.0, %v962_v2  ;;  %v1815_v2 = vld [vmem:[%s2223_s5] sm:$0xff]  }
 0x3da   : > { %v965_v4 = vsel %vm818_vm7, %v964_v3, 0.0 }
 0x3db   : > { %v966_v5 = vmax.f32 %v965_v4, 0.0 }
 0x3dd   : > { %v967_v6 = vpack.c.bf16 %v966_v5, %v966_v5 }
 0x3df   : > { %1714 = vmatmul.mubr.msk.bf16.vlgmr.msra.gmra.mrb[24].mxu1 %vm500_vm4, %v967_v6  ;;  %v971_v7 = vshll.u32 %v967_v6, 16  ;;  %v969_v8 = vshrl.u32 %v967_v6, 16  ;;  %v1061_v11 = vrot.slane %v967_v6, 1 }
 0x3e0   : > { %1724 = vmatpush3.bf16.msra.mxu1 %v2028_v15  ;;  %1725 = vmatprep.mubr.msk.bf16.mxu1 %vm1885_vm0, %v1884_v1 }
 0x3e1   : > { %v973_v9 = vrot.slane %v971_v7, 1  ;;  %1735 = vmatprep.subr.bf16.mxu1 %v1884_v1 }
 0x3e3   : > { %v974_v10 = vor.u32 %v973_v9, %v969_v8 }
 0x3e5   : > { %1708 = vmatmul.mubr.msk.bf16.vlgmr.msra.gmra.mrb[24].mxu0 %vm500_vm4, %v974_v10 }
 0x3e6   : > { %1718 = vmatpush3.bf16.msra.mxu0 %v2046_v40  ;;  %1719 = vmatprep.mubr.msk.bf16.mxu0 %vm1885_vm0, %v1884_v1 }
 0x3e7   : > { %1729 = vmatprep.subr.bf16.mxu0 %v1884_v1 }
 0x3ed   : > { %1720 = vmatmul.mubr.msk.bf16.vlgmr.msra.gmra.mrb[28].mxu0 %vm500_vm4, %v1061_v11 }
 0x3ee   : > { %1730 = vmatpush3.bf16.msra.mxu0 %v2022_v14  ;;  %1731 = vmatprep.mubr.msk.bf16.mxu0 %vm1885_vm0, %v1884_v1 }
 0x3ef   : > { %1741 = vmatprep.subr.bf16.mxu0 %v1884_v1 }
 0x4b2   : > { %v1054_v12 = vpop.f32.mrb[24].mxu1 }
 0x4b3   : > { %v1715_v13 = vpop.f32.mrb[25].mxu1 }
 0x4b4   : > { %v1057_v16 = vpop.f32.mrb[26].mxu1 }
 0x4b5   : > { %v1716_v17 = vpop.f32.mrb[27].mxu1 }
 0x4b8   : > { %v1012_v18 = vpop.f32.mrb[24].mxu0 }
 0x4b9   : > { %v1055_v19 = vadd.f32 %v1054_v12, %v1012_v18  ;;  %v1709_v20 = vpop.f32.mrb[25].mxu0 }
 0x4ba   : > { %v1015_v21 = vpop.f32.mrb[26].mxu0  ;;  %v1456_v20 = vand.u32 127, %v645_v45 }
 0x4bb   : > { %v1710_v22 = vpop.f32.mrb[27].mxu0  ;;  %v1405_v21 = vld [vmem:[%s2224_s6] sm:$0x1] }
 0x4bc   : > { %vm1457_vm9 = vcmp.lt.s32.totalorder %v1456_v20, 4 }
 0x4c0   : > { %v1099_v23 = vpop.f32.mrb[28].mxu0 }
 0x4c1   : > { %v1105_v24 = vadd.f32 %v1099_v23, %v1055_v19  ;;  %v1721_v25 = vpop.f32.mrb[29].mxu0 }
 0x4c2   : > { %v1102_v26 = vpop.f32.mrb[30].mxu0 }
 0x4c3   : > { %v1106_v27 = vadd.f32 %v1105_v24, %v2065_v56  ;;  %v1722_v28 = vpop.f32.mrb[31].mxu0 }
 0x4c5   : > { %v1107_v29 = vadd.f32 %v1106_v27, %v2088_v35 }
 0x4c7   : > { %v1109_v30 = vsel %vm1108_vm8, %v1107_v29, 0.0 }
 0x4c8   : > { %v1111_v31 = vrot.slane %v1109_v30, 1  ;;  %v1114_v33 = vrot.slane %v1109_v30, 2 }
 0x4ca   : > { %v1113_v32 = vmax.f32 %v1109_v30, %v1111_v31 }
 0x4cc   : > { %v2128_v34 = vmax.f32 %v1113_v32, %v1114_v33 }
 0x4ce   : > { %v1118_v36 = vrot.slane %v2128_v34, 7 }
 0x4d0   : > { %v1120_v37 = vsel %vm481_vm2, 0.0, %v1118_v36 }
 0x4d1   : > { %v1121_v38 = vsel %vm812_vm6, %v1120_v37, 0.0 }
 0x4d2   : > { %v1122_v39 = vmax.f32 %v1121_v38, 0.0 }
 0x4d4   : > { %v1123_v41 = vpack.c.bf16 %v1122_v39, %v1122_v39 }
 0x4d6   : > { %1732 = vmatmul.mubr.msk.bf16.vlgmr.msra.gmra.mrb[32].mxu0 %vm500_vm4, %v1123_v41  ;;  %v1125_v56 = vshrl.u32 %v1123_v41, 16  ;;  %v1213_v35 = vrot.slane %v1123_v41, 1 }
 0x4d7   : > { %1742 = vmatpush3.bf16.msra.mxu0 %v2028_v15  ;;  %1743 = vmatprep.mubr.msk.bf16.mxu0 %vm1885_vm0, %v1884_v1 }
 0x4d8   : > { %1726 = vmatmul.mubr.msk.bf16.vlgmr.msra.gmra.mrb[28].mxu1 %vm500_vm4, %v1125_v56  ;;  %1753 = vmatprep.subr.bf16.mxu0 %v1884_v1 }
 0x4d9   : > { %1736 = vmatpush3.bf16.msra.mxu1 %v2046_v40  ;;  %1737 = vmatprep.mubr.msk.bf16.mxu1 %vm1885_vm0, %v1884_v1 }
 0x4da   : > { %1747 = vmatprep.subr.bf16.mxu1 %v1884_v1 }
 0x4e0   : > { %1738 = vmatmul.mubr.msk.bf16.vlgmr.msra.gmra.mrb[32].mxu1 %vm500_vm4, %v1213_v35 }
 0x4e1   : > { %1748 = vmatpush3.bf16.msra.mxu1 %v2022_v14  ;;  %1749 = vmatprep.mubr.msk.bf16.mxu1 %vm1885_vm0, %v1884_v1 }
 0x4e2   : > { %1759 = vmatprep.subr.bf16.mxu1 %v1884_v1 }
 0x5a9   : > { %v1206_v15 = vpop.f32.mrb[32].mxu0 }
 0x5aa   : > { %v1733_v42 = vpop.f32.mrb[33].mxu0 }
 0x5ab   : > { %v1164_v43 = vpop.f32.mrb[28].mxu1  ;;  %v1209_v44 = vpop.f32.mrb[34].mxu0 }
 0x5ac   : > { %v1207_v46 = vadd.f32 %v1206_v15, %v1164_v43  ;;  %v1727_v47 = vpop.f32.mrb[29].mxu1  ;;  %v1734_v48 = vpop.f32.mrb[35].mxu0 }
 0x5ad   : > { %v1167_v49 = vpop.f32.mrb[30].mxu1 }
 0x5ae   : > { %v1728_v50 = vpop.f32.mrb[31].mxu1 }
 0x5b3   : > { %v1251_v51 = vpop.f32.mrb[32].mxu1 }
 0x5b4   : > { %v1257_v52 = vadd.f32 %v1251_v51, %v1207_v46  ;;  %v1739_v53 = vpop.f32.mrb[33].mxu1 }
 0x5b5   : > { %v1254_v54 = vpop.f32.mrb[34].mxu1 }
 0x5b6   : > { %v1258_v14 = vadd.f32 %v1257_v52, %v2062_v55  ;;  %v1740_v57 = vpop.f32.mrb[35].mxu1 }
 0x5b8   : > { %v1260_v58 = vrot.slane %v1258_v14, 7 }
 0x5ba   : > { %v1262_v59 = vsel %vm481_vm2, 0.0, %v1260_v58 }
 0x5bb   : > { %v1263_v60 = vsel %vm812_vm6, %v1262_v59, 0.0 }
 0x5bc   : > { %v1264_v61 = vmax.f32 %v1263_v60, 0.0 }
 0x5be   : > { %v1265_v62 = vpack.c.bf16 %v1264_v61, %v1264_v61 }
 0x5c0   : > { %v1267_v63 = vshrl.u32 %v1265_v62, 16  ;;  %1750 = vmatmul.mubr.msk.bf16.vlgmr.msra.gmra.mrb[36].mxu1 %vm500_vm4, %v1265_v62  ;;  %v1355_v0 = vrot.slane %v1265_v62, 1 }
 0x5c1   : > { %1761 = vmatprep.mubr.msk.bf16.mxu1 %vm1885_vm0, %v1884_v1  ;;  %1760 = vmatpush3.bf16.msra.mxu1 %v1815_v2 }
 0x5c2   : > { %1744 = vmatmul.mubr.msk.bf16.vlgmr.msra.gmra.mrb[36].mxu0 %vm500_vm4, %v1267_v63 }
 0x5c3   : > { %1754 = vmatpush3.bf16.msra.mxu0 %v2046_v40  ;;  %1755 = vmatprep.mubr.msk.bf16.mxu0 %vm1885_vm0, %v1884_v1 }
 0x5ca   : > { %1756 = vmatmul.mubr.msk.bf16.vlgmr.msra.gmra.mrb[40].mxu0 %vm500_vm4, %v1355_v0 }
 0x693   : > { %v1348_v3 = vpop.f32.mrb[36].mxu1 }
 0x694   : > { %v1751_v4 = vpop.f32.mrb[37].mxu1 }
 0x695   : > { %v1306_v5 = vpop.f32.mrb[36].mxu0  ;;  %v1351_v6 = vpop.f32.mrb[38].mxu1 }
 0x696   : > { %v1349_v7 = vadd.f32 %v1348_v3, %v1306_v5  ;;  %v1745_v8 = vpop.f32.mrb[37].mxu0  ;;  %v1752_v9 = vpop.f32.mrb[39].mxu1 }
 0x697   : > { %v1309_v10 = vpop.f32.mrb[38].mxu0 }
 0x698   : > { %v1746_v40 = vpop.f32.mrb[39].mxu0 }
 0x69d   : > { %v1393_v11 = vpop.f32.mrb[40].mxu0 }
 0x69e   : > { %v1399_v12 = vadd.f32 %v1393_v11, %v1349_v7  ;;  %v1757_v1 = vpop.f32.mrb[41].mxu0 }
 0x69f   : > { %v1396_v13 = vpop.f32.mrb[42].mxu0 }
 0x6a0   : > { %v1400_v16 = vadd.f32 %v1399_v12, %v2062_v55  ;;  %v1758_v17 = vpop.f32.mrb[43].mxu0 }
 0x6a2   : > { %v1401_v18 = vadd.f32 %v1400_v16, %v2128_v34 }
 0x6a4   : > { %v1402_v19 = vpack.c.bf16 %v1401_v18, %v1401_v18 }
 0x6a6   : > { %1762 = vmatmul.mubr.msk.bf16.vlgmr.msra.gmra.mrb[40].mxu1 %vm500_vm4, %v1402_v19 }
 0x779   : > { %v1449_v22 = vpop.f32.mrb[40].mxu1 }
 0x77a   : > { %v1450_v23 = vadd.f32 %v1449_v22, %v1405_v21  ;;  %v1763_v24 = vpop.f32.mrb[41].mxu1 }
 0x77b   : > { %v1452_v25 = vpop.f32.mrb[42].mxu1 }
 0x77c   : > { %v1764_v55 = vpop.f32.mrb[43].mxu1  ;;  %v1458_v26 = vsel %vm1457_vm9, %v1450_v23, -1e+30 }
 0x77d   : > { %v1459_v27 = vsel %vm481_vm2, %v1458_v26, -inf }
 0x77e   : > { %1460 = vmax.xlane.f32.xlu0 %v1459_v27 }
 0x80b   : > { %v1461_v28 = vpop.xlane.xlu0 %1460 }
 0x80c   : > { %v1462_v29 = vsub.f32 %v1458_v26, %v1461_v28 }
 0x80e   : > { %v1463_v30 = vmul.f32 1.442695, %v1462_v29 }
 0x810   : > { %1816 = vpow2.f32 %v1463_v30 }
 0x81a   : > { %v1817_v45 = vpop.eup %1816 }
 0x81b   : > { %v1465_v31 = vsel %vm481_vm2, %v1817_v45, 0.0 }
 0x81c   : > { %1466 = vadd.xlane.f32.xlu0 %v1465_v31 }
 0x8a9   : > { %v1467_v32 = vpop.xlane.xlu0 %1466 }
 0x8aa   : > { %1818 = vrcp.f32 %v1467_v32 }
 0x8b4   : > { %v1819_v33 = vpop.eup %1818 }
 0x8b5   : > { %v1469_v34 = vmul.f32 %v1819_v33, %v1817_v45 }
 0x8b7   : > { %1470 = vst [vmem:[%s268_s18] sm:$0x1] %v1469_v34 }
 0x8b8   : > { %1833 = shalt.err (!%p1830_p3)
}
 0x8b9   : > { %s1834_s13 = scalar_lea.hbm %s2176_s22, 16  ;;  %s1838_s16 = scalar_lea.hbm %s2225_s7, 32 }
 0x8ba   : > { %p1835_p4 = scmp.ne.s32.totalorder %s2176_s22, %s1834_s13  ;;  %p1839_p9 = scmp.lt.u32.totalorder %s2176_s22, %s2225_s7 }
 0x8bb   : > { %p1840_p10 = scmp.lt.u32.totalorder %s1838_s16, %s1834_s13  ;;  %p1842_p12 = scmp.lt.u32.totalorder %s1834_s13, %s2176_s22 }
 0x8bc   : > { %p1836_p7 = pnand %p1835_p4, %p1965_p5 }
 0x8bd   : > { %p1841_p11 = por %p1840_p10, %p1839_p9 }
 0x8be   : > { %p1837_p8 = pneg %p1836_p7 }
 0x8bf   : > { %p1843_p13 = por %p1842_p12, %p1841_p11 }
 0x8c1   : > { %p1844_p0 = pnand %p1843_p13, %p1837_p8 }
 0x8c3   : > { %1847 = shalt.err (!%p1844_p0)
}
 0x8c4   : > { %1765 = dma.vmem_to_hbm [thread:$0]  (%p1965_p5), %s2178_s19, 16, %s2176_s22, %s1472_s23  }
 0x8c5 PF: > { %p1771_p1 = scmp.ge.s32.totalorder %s1882_s27, 2  ;;  %s1496_s20 = sand.u32 1, %s1870_s24  }
 0x8c6   : > { %s1497_s21 = scalar_lea.sflag [#allocation3], %s1496_s20 }
 0x8c7   : > { %p1768_p2 = pnand %p1771_p1, %p1969_p6 }
 0x8c9   : > { %1865 = dma.done.wait (!%p1768_p2), %s1497_s21, 16  }
 0x8ca   : > { %1867 = vsyncadd (!%p1768_p2), %s1497_s21, 4294967280  ;;  %p17_p3 = scmp.ge.s32.totalorder %s1952_s30, 4   ;;  %s2228_s24 = smov %s1874_s25 }
 0x8cb   : > { %s2229_s25 = smov %s1878_s26  ;;  %s2230_s26 = smov %s1963_s10 }
 0x8cc   : > { %s2231_s27 = smov %s1952_s30  ;;  %19 = sbr.rel (!%p17_p3) target bundleno = 3 (0x3), region = 83 }
 0x8d3   :  { %1501 = vsyncpa [#allocation3], 1 }
 0x8d4   :  { %1503 = vsyncpa [#allocation3 + $0x1], 1 }

</bundles_post_ra>
